<compile_context>
chip_gen: v6e
topology: v6e:2x2x1
jax: 0.10.0
libtpu: 0.0.40
codegen_flags: <defaults>
</compile_context>

<pallas_src>
import functools

import jax
import jax.numpy as jnp
from jax.experimental import pallas as pl
from jax.experimental.pallas import tpu as pltpu

EPS = 1e-5


def _bn_stats_kernel(x_ref, gamma_ref, beta_ref, scale_ref, shift_ref,
                     sum_ref, sq_ref, *, inv_count, eps):
    n, t = pl.program_id(0), pl.program_id(1)
    is_first = jnp.logical_and(n == 0, t == 0)
    is_last = jnp.logical_and(n == pl.num_programs(0) - 1,
                              t == pl.num_programs(1) - 1)

    @pl.when(is_first)
    def _():
        sum_ref[...] = jnp.zeros_like(sum_ref)
        sq_ref[...] = jnp.zeros_like(sq_ref)

    x = x_ref[...].astype(jnp.float32)                    # (C, hw_tile)
    sum_ref[...] += jnp.sum(x, axis=-1, keepdims=True)    # (C, 1)
    sq_ref[...] += jnp.sum(x * x, axis=-1, keepdims=True)  # (C, 1)

    @pl.when(is_last)
    def _():
        mean = sum_ref[...] * inv_count
        var = jnp.maximum(sq_ref[...] * inv_count - mean * mean, 0.0)
        inv_std = jax.lax.rsqrt(var + eps)
        scale = gamma_ref[...] * inv_std                  # (C, 1)
        scale_ref[...] = scale
        shift_ref[...] = beta_ref[...] - mean * scale


def _bn_norm_kernel(x_ref, scale_ref, shift_ref, o_ref):
    # Affine folded into per-channel scale/shift: 1 mul + 1 add per element.
    o_ref[...] = (x_ref[...] * scale_ref[...] + shift_ref[...]).astype(o_ref.dtype)


def _pick_hw_tile(hw):
    # Largest lane-friendly tile (multiple of 128) that evenly divides HW,
    # else fall back to the full spatial extent as a single block.
    for cand in (2048, 1024, 512, 256, 128):
        if hw % cand == 0:
            return cand
    return hw


def batchnorm2d(x_nchw, gamma, beta, eps=EPS):
    """x_nchw: (N, C, H, W); gamma, beta: (C,). Returns (N, C, H, W)."""
    N, C, H, W = x_nchw.shape
    HW = H * W
    x = x_nchw.reshape(N, C, HW)          # free view of the contiguous NCHW tensor
    g = gamma.reshape(C, 1).astype(jnp.float32)
    b = beta.reshape(C, 1).astype(jnp.float32)

    hw_tile = _pick_hw_tile(HW)
    T = HW // hw_tile
    grid = (N, T)
    inv_count = 1.0 / float(N * HW)
    elems = N * C * HW

    x_spec = pl.BlockSpec((None, C, hw_tile), lambda n, t: (n, 0, t))
    cvec_spec = pl.BlockSpec((C, 1), lambda n, t: (0, 0))

    # Pass 1: per-channel scale / shift (accumulator resident across the whole grid).
    scale, shift = pl.pallas_call(
        functools.partial(_bn_stats_kernel, inv_count=inv_count, eps=eps),
        grid=grid,
        in_specs=[x_spec, cvec_spec, cvec_spec],
        out_specs=(cvec_spec, cvec_spec),
        out_shape=(jax.ShapeDtypeStruct((C, 1), jnp.float32),
                   jax.ShapeDtypeStruct((C, 1), jnp.float32)),
        scratch_shapes=[pltpu.VMEM((C, 1), jnp.float32),
                        pltpu.VMEM((C, 1), jnp.float32)],
        compiler_params=pltpu.CompilerParams(
            dimension_semantics=("arbitrary", "arbitrary")),
        cost_estimate=pl.CostEstimate(flops=3 * elems, transcendentals=C,
                                      bytes_accessed=4 * elems),
    )(x, g, b)

    # Pass 2: y = x * scale + shift over fully parallel tiles.
    out = pl.pallas_call(
        _bn_norm_kernel,
        grid=grid,
        in_specs=[x_spec, cvec_spec, cvec_spec],
        out_specs=x_spec,
        out_shape=jax.ShapeDtypeStruct((N, C, HW), x_nchw.dtype),
        compiler_params=pltpu.CompilerParams(
            dimension_semantics=("parallel", "parallel")),
        cost_estimate=pl.CostEstimate(flops=2 * elems, transcendentals=0,
                                      bytes_accessed=8 * elems),
    )(x, scale, shift)

    return out.reshape(N, C, H, W)        # free view back to NCHW


if __name__ == "__main__":
    key = jax.random.PRNGKey(0)
    kx, kg, kb = jax.random.split(key, 3)

    N, C, H, W = 1, 128, 28, 28  # matches BatchNorm2d(128) on [1, 128, 28, 28]
    x = jax.random.normal(kx, (N, C, H, W), dtype=jnp.float32)
    # PyTorch default init is ones/zeros; perturb so the affine path is exercised.
    gamma = 1.0 + 0.1 * jax.random.normal(kg, (C,), dtype=jnp.float32)
    beta = 0.1 * jax.random.normal(kb, (C,), dtype=jnp.float32)

    bn = jax.jit(batchnorm2d)
    out = bn(x, gamma, beta)
    out = jax.block_until_ready(out)

    # Plain-JAX reference (training-mode batch-stat BatchNorm2d semantics).
    mean = jnp.mean(x, axis=(0, 2, 3), keepdims=True)
    var = jnp.mean((x - mean) ** 2, axis=(0, 2, 3), keepdims=True)
    ref = (x - mean) / jnp.sqrt(var + EPS) * gamma.reshape(1, C, 1, 1) + beta.reshape(1, C, 1, 1)
    assert out.shape == (N, C, H, W)
    assert jnp.allclose(out, ref, atol=1e-4, rtol=1e-4)

    print("KERNEL_OK")
</pallas_src>

<mosaic_0001>
module attributes {stable_mosaic.version = 11 : i64} {
  func.func @_bn_norm_kernel(%arg0: i32, %arg1: i32, %arg2: memref<1x128x784xf32, #tpu.memory_space<vmem>>, %arg3: memref<128x1xf32, #tpu.memory_space<vmem>>, %arg4: memref<128x1xf32, #tpu.memory_space<vmem>>, %arg5: memref<1x128x784xf32, #tpu.memory_space<vmem>>) attributes {dimension_semantics = [#tpu.dimension_semantics<parallel>, #tpu.dimension_semantics<parallel>], iteration_bounds = array<i64: 1, 1>, scalar_prefetch = 0 : i64, scratch_operands = 0 : i64, tpu.core_type = #tpu.core_type<tc>, window_params = [{transform_indices = @transform_0, window_bounds = array<i64: 1, 128, 784>}, {pipeline_mode = #tpu.pipeline_mode<synchronous>, transform_indices = @transform_1, window_bounds = array<i64: 128, 1>}, {pipeline_mode = #tpu.pipeline_mode<synchronous>, transform_indices = @transform_2, window_bounds = array<i64: 128, 1>}, {transform_indices = @transform_3, window_bounds = array<i64: 1, 128, 784>}]} {
    %c0 = arith.constant 0 : index
    %c0_0 = arith.constant 0 : index
    %c0_1 = arith.constant 0 : index
    %0 = vector.load %arg2[%c0, %c0_0, %c0_1] : memref<1x128x784xf32, #tpu.memory_space<vmem>>, vector<1x128x784xf32>
    %1 = vector.shape_cast %0 : vector<1x128x784xf32> to vector<128x784xf32>
    %c0_2 = arith.constant 0 : index
    %c0_3 = arith.constant 0 : index
    %2 = vector.load %arg3[%c0_2, %c0_3] : memref<128x1xf32, #tpu.memory_space<vmem>>, vector<128x1xf32>
    %3 = vector.broadcast %2 : vector<128x1xf32> to vector<128x784xf32>
    %4 = arith.mulf %1, %3 : vector<128x784xf32>
    %c0_4 = arith.constant 0 : index
    %c0_5 = arith.constant 0 : index
    %5 = vector.load %arg4[%c0_4, %c0_5] : memref<128x1xf32, #tpu.memory_space<vmem>>, vector<128x1xf32>
    %6 = vector.broadcast %5 : vector<128x1xf32> to vector<128x784xf32>
    %7 = arith.addf %4, %6 : vector<128x784xf32>
    %c0_6 = arith.constant 0 : index
    %c0_7 = arith.constant 0 : index
    %c0_8 = arith.constant 0 : index
    %8 = vector.load %arg5[%c0_6, %c0_7, %c0_8] : memref<1x128x784xf32, #tpu.memory_space<vmem>>, vector<1x128x784xf32>
    %9 = vector.shape_cast %8 : vector<1x128x784xf32> to vector<128x784xf32>
    %10 = vector.shape_cast %7 : vector<128x784xf32> to vector<1x128x784xf32>
    tpu.vector_store %arg5[%c0_6, %c0_7, %c0_8], %10 {strides = array<i32>} : memref<1x128x784xf32, #tpu.memory_space<vmem>>, vector<1x128x784xf32>,
    return
  }
  func.func @transform_0(%arg0: i32, %arg1: i32) -> (i32, i32, i32) {
    %c0_i32 = arith.constant 0 : i32
    %c0_i32_0 = arith.constant 0 : i32
    return %arg0, %c0_i32, %arg1 : i32, i32, i32
  }
  func.func @transform_1(%arg0: i32, %arg1: i32) -> (i32, i32) {
    %c0_i32 = arith.constant 0 : i32
    %c0_i32_0 = arith.constant 0 : i32
    %c0_i32_1 = arith.constant 0 : i32
    return %c0_i32, %c0_i32_0 : i32, i32
  }
  func.func @transform_2(%arg0: i32, %arg1: i32) -> (i32, i32) {
    %c0_i32 = arith.constant 0 : i32
    %c0_i32_0 = arith.constant 0 : i32
    %c0_i32_1 = arith.constant 0 : i32
    return %c0_i32, %c0_i32_0 : i32, i32
  }
  func.func @transform_3(%arg0: i32, %arg1: i32) -> (i32, i32, i32) {
    %c0_i32 = arith.constant 0 : i32
    %c0_i32_0 = arith.constant 0 : i32
    return %arg0, %c0_i32, %arg1 : i32, i32, i32
  }
}

module attributes {stable_mosaic.version = 11 : i64} {
  func.func @_bn_stats_kernel(%arg0: i32, %arg1: i32, %arg2: memref<1x128x784xf32, #tpu.memory_space<vmem>>, %arg3: memref<128x1xf32, #tpu.memory_space<vmem>>, %arg4: memref<128x1xf32, #tpu.memory_space<vmem>>, %arg5: memref<128x1xf32, #tpu.memory_space<vmem>>, %arg6: memref<128x1xf32, #tpu.memory_space<vmem>>, %arg7: memref<128x1xf32, #tpu.memory_space<vmem>>, %arg8: memref<128x1xf32, #tpu.memory_space<vmem>>) attributes {dimension_semantics = [#tpu.dimension_semantics<arbitrary>, #tpu.dimension_semantics<arbitrary>], iteration_bounds = array<i64: 1, 1>, scalar_prefetch = 0 : i64, scratch_operands = 2 : i64, tpu.core_type = #tpu.core_type<tc>, window_params = [{transform_indices = @transform_0, window_bounds = array<i64: 1, 128, 784>}, {pipeline_mode = #tpu.pipeline_mode<synchronous>, transform_indices = @transform_1, window_bounds = array<i64: 128, 1>}, {pipeline_mode = #tpu.pipeline_mode<synchronous>, transform_indices = @transform_2, window_bounds = array<i64: 128, 1>}, {pipeline_mode = #tpu.pipeline_mode<synchronous>, transform_indices = @transform_3, window_bounds = array<i64: 128, 1>}, {pipeline_mode = #tpu.pipeline_mode<synchronous>, transform_indices = @transform_4, window_bounds = array<i64: 128, 1>}]} {
    %c0_i32 = arith.constant 0 : i32
    %0 = arith.cmpi eq, %arg0, %c0_i32 : i32
    %c0_i32_0 = arith.constant 0 : i32
    %1 = arith.cmpi eq, %arg1, %c0_i32_0 : i32
    %2 = arith.andi %0, %1 : i1
    %c0_i32_1 = arith.constant 0 : i32
    %3 = arith.cmpi eq, %arg0, %c0_i32_1 : i32
    %c0_i32_2 = arith.constant 0 : i32
    %4 = arith.cmpi eq, %arg1, %c0_i32_2 : i32
    %5 = arith.andi %3, %4 : i1
    %6 = arith.extui %2 : i1 to i32
    %c0_i32_3 = arith.constant 0 : i32
    %7 = arith.cmpi ne, %6, %c0_i32_3 : i32
    scf.if %7 {
      %cst_16 = arith.constant 0.000000e+00 : f32
      %23 = vector.broadcast %cst_16 : f32 to vector<128x1xf32>
      %c0_17 = arith.constant 0 : index
      %c0_18 = arith.constant 0 : index
      %24 = vector.load %arg7[%c0_17, %c0_18] : memref<128x1xf32, #tpu.memory_space<vmem>>, vector<128x1xf32>
      tpu.vector_store %arg7[%c0_17, %c0_18], %23 {strides = array<i32>} : memref<128x1xf32, #tpu.memory_space<vmem>>, vector<128x1xf32>,
      %cst_19 = arith.constant 0.000000e+00 : f32
      %25 = vector.broadcast %cst_19 : f32 to vector<128x1xf32>
      %c0_20 = arith.constant 0 : index
      %c0_21 = arith.constant 0 : index
      %26 = vector.load %arg8[%c0_20, %c0_21] : memref<128x1xf32, #tpu.memory_space<vmem>>, vector<128x1xf32>
      tpu.vector_store %arg8[%c0_20, %c0_21], %25 {strides = array<i32>} : memref<128x1xf32, #tpu.memory_space<vmem>>, vector<128x1xf32>,
    } else {
    }
    %c0 = arith.constant 0 : index
    %c0_4 = arith.constant 0 : index
    %c0_5 = arith.constant 0 : index
    %8 = vector.load %arg2[%c0, %c0_4, %c0_5] : memref<1x128x784xf32, #tpu.memory_space<vmem>>, vector<1x128x784xf32>
    %9 = vector.shape_cast %8 : vector<1x128x784xf32> to vector<128x784xf32>
    %c0_6 = arith.constant 0 : index
    %c0_7 = arith.constant 0 : index
    %10 = vector.load %arg7[%c0_6, %c0_7] : memref<128x1xf32, #tpu.memory_space<vmem>>, vector<128x1xf32>
    %cst = arith.constant dense<0.000000e+00> : vector<128xf32>
    %11 = vector.multi_reduction <add>, %9, %cst [1] : vector<128x784xf32> to vector<128xf32>
    %12 = vector.shape_cast %11 : vector<128xf32> to vector<128x1xf32>
    %13 = arith.addf %10, %12 : vector<128x1xf32>
    %c0_8 = arith.constant 0 : index
    %c0_9 = arith.constant 0 : index
    %14 = vector.load %arg7[%c0_8, %c0_9] : memref<128x1xf32, #tpu.memory_space<vmem>>, vector<128x1xf32>
    tpu.vector_store %arg7[%c0_8, %c0_9], %13 {strides = array<i32>} : memref<128x1xf32, #tpu.memory_space<vmem>>, vector<128x1xf32>,
    %c0_10 = arith.constant 0 : index
    %c0_11 = arith.constant 0 : index
    %15 = vector.load %arg8[%c0_10, %c0_11] : memref<128x1xf32, #tpu.memory_space<vmem>>, vector<128x1xf32>
    %16 = arith.mulf %9, %9 : vector<128x784xf32>
    %cst_12 = arith.constant dense<0.000000e+00> : vector<128xf32>
    %17 = vector.multi_reduction <add>, %16, %cst_12 [1] : vector<128x784xf32> to vector<128xf32>
    %18 = vector.shape_cast %17 : vector<128xf32> to vector<128x1xf32>
    %19 = arith.addf %15, %18 : vector<128x1xf32>
    %c0_13 = arith.constant 0 : index
    %c0_14 = arith.constant 0 : index
    %20 = vector.load %arg8[%c0_13, %c0_14] : memref<128x1xf32, #tpu.memory_space<vmem>>, vector<128x1xf32>
    tpu.vector_store %arg8[%c0_13, %c0_14], %19 {strides = array<i32>} : memref<128x1xf32, #tpu.memory_space<vmem>>, vector<128x1xf32>,
    %21 = arith.extui %5 : i1 to i32
    %c0_i32_15 = arith.constant 0 : i32
    %22 = arith.cmpi ne, %21, %c0_i32_15 : i32
    scf.if %22 {
      %c0_16 = arith.constant 0 : index
      %c0_17 = arith.constant 0 : index
      %23 = vector.load %arg7[%c0_16, %c0_17] : memref<128x1xf32, #tpu.memory_space<vmem>>, vector<128x1xf32>
      %cst_18 = arith.constant 0.00127551018 : f32
      %24 = vector.broadcast %cst_18 : f32 to vector<128x1xf32>
      %25 = arith.mulf %23, %24 : vector<128x1xf32>
      %c0_19 = arith.constant 0 : index
      %c0_20 = arith.constant 0 : index
      %26 = vector.load %arg8[%c0_19, %c0_20] : memref<128x1xf32, #tpu.memory_space<vmem>>, vector<128x1xf32>
      %cst_21 = arith.constant 0.00127551018 : f32
      %27 = vector.broadcast %cst_21 : f32 to vector<128x1xf32>
      %28 = arith.mulf %26, %27 : vector<128x1xf32>
      %29 = arith.mulf %25, %25 : vector<128x1xf32>
      %30 = arith.subf %28, %29 : vector<128x1xf32>
      %cst_22 = arith.constant 0.000000e+00 : f32
      %31 = vector.broadcast %cst_22 : f32 to vector<128x1xf32>
      %32 = arith.maximumf %30, %31 : vector<128x1xf32>
      %cst_23 = arith.constant 9.99999974E-6 : f32
      %33 = vector.broadcast %cst_23 : f32 to vector<128x1xf32>
      %34 = arith.addf %32, %33 : vector<128x1xf32>
      %35 = math.rsqrt %34 : vector<128x1xf32>
      %c0_24 = arith.constant 0 : index
      %c0_25 = arith.constant 0 : index
      %36 = vector.load %arg3[%c0_24, %c0_25] : memref<128x1xf32, #tpu.memory_space<vmem>>, vector<128x1xf32>
      %37 = arith.mulf %36, %35 : vector<128x1xf32>
      %c0_26 = arith.constant 0 : index
      %c0_27 = arith.constant 0 : index
      %38 = vector.load %arg5[%c0_26, %c0_27] : memref<128x1xf32, #tpu.memory_space<vmem>>, vector<128x1xf32>
      tpu.vector_store %arg5[%c0_26, %c0_27], %37 {strides = array<i32>} : memref<128x1xf32, #tpu.memory_space<vmem>>, vector<128x1xf32>,
      %c0_28 = arith.constant 0 : index
      %c0_29 = arith.constant 0 : index
      %39 = vector.load %arg4[%c0_28, %c0_29] : memref<128x1xf32, #tpu.memory_space<vmem>>, vector<128x1xf32>
      %40 = arith.mulf %25, %37 : vector<128x1xf32>
      %41 = arith.subf %39, %40 : vector<128x1xf32>
      %c0_30 = arith.constant 0 : index
      %c0_31 = arith.constant 0 : index
      %42 = vector.load %arg6[%c0_30, %c0_31] : memref<128x1xf32, #tpu.memory_space<vmem>>, vector<128x1xf32>
      tpu.vector_store %arg6[%c0_30, %c0_31], %41 {strides = array<i32>} : memref<128x1xf32, #tpu.memory_space<vmem>>, vector<128x1xf32>,
    } else {
    }
    return
  }
  func.func @transform_0(%arg0: i32, %arg1: i32) -> (i32, i32, i32) {
    %c0_i32 = arith.constant 0 : i32
    %c0_i32_0 = arith.constant 0 : i32
    return %arg0, %c0_i32, %arg1 : i32, i32, i32
  }
  func.func @transform_1(%arg0: i32, %arg1: i32) -> (i32, i32) {
    %c0_i32 = arith.constant 0 : i32
    %c0_i32_0 = arith.constant 0 : i32
    %c0_i32_1 = arith.constant 0 : i32
    return %c0_i32, %c0_i32_0 : i32, i32
  }
  func.func @transform_2(%arg0: i32, %arg1: i32) -> (i32, i32) {
    %c0_i32 = arith.constant 0 : i32
    %c0_i32_0 = arith.constant 0 : i32
    %c0_i32_1 = arith.constant 0 : i32
    return %c0_i32, %c0_i32_0 : i32, i32
  }
  func.func @transform_3(%arg0: i32, %arg1: i32) -> (i32, i32) {
    %c0_i32 = arith.constant 0 : i32
    %c0_i32_0 = arith.constant 0 : i32
    %c0_i32_1 = arith.constant 0 : i32
    return %c0_i32, %c0_i32_0 : i32, i32
  }
  func.func @transform_4(%arg0: i32, %arg1: i32) -> (i32, i32) {
    %c0_i32 = arith.constant 0 : i32
    %c0_i32_0 = arith.constant 0 : i32
    %c0_i32_1 = arith.constant 0 : i32
    return %c0_i32, %c0_i32_0 : i32, i32
  }
}

</mosaic_0001>

<bundles_post_ra>
// kernel: batchnorm2d.2
= control target key start
LH: loop header
LB: loop body
LE: loop exit
PB: predicated region body
PF: predicated region fallthrough
CT: control target
= control target key end

     0   :  { %vm22_vm0 = vcmask 7168   ;;  %v964_v3 = vmov 0.0   ;;  %vm188_vm1 = vcmask 130048   ;;  %s2221_s0 = inlined_call_operand.vmem [shape: f32[1,128,784], index: 0, kind: input, shape index: {}]   ;;  %s2222_s1 = inlined_call_operand.vmem [shape: f32[128,1], index: 1, kind: input, shape index: {}]   ;;  %s2223_s2 = inlined_call_operand.vmem [shape: f32[128,1], index: 2, kind: input, shape index: {}]   ;;  %s2224_s3 = inlined_call_operand.vmem [shape: f32[128,1], index: 3, kind: output, shape index: {0}]   ;;  %s2225_s4 = inlined_call_operand.vmem [shape: f32[128,1], index: 4, kind: output, shape index: {1}]  }
   0x1   :  { %v69_v0 = vld [vmem:[%s2221_s0 + $0x70] sm:$0xff]  ;;  %v70_v1 = vld [vmem:[%s2221_s0 + $0x78] sm:$0xff]  ;;  %v71_v2 = vld [vmem:[%s2221_s0 + $0x80] sm:$0xff]  ;;  %25 = vst.msk [vmem:[#allocation2 + $0x10] sm:$0xff] %vm22_vm0, %v964_v3 }
   0x2   :  { %23 = vst.msk [vmem:[#allocation2] sm:$0xff] %vm22_vm0, %v964_v3  ;;  %24 = vst.msk [vmem:[#allocation2 + $0x8] sm:$0xff] %vm22_vm0, %v964_v3  ;;  %v72_v4 = vld [vmem:[%s2221_s0 + $0x88] sm:$0xff]  ;;  %v202_v5 = vadd.f32 %v70_v1, %v69_v0  ;;  %v75_v6 = vld [vmem:[%s2221_s0 + $0xa0] sm:$0xff]  ;;  %v1037_v7 = vmul.f32 %v69_v0, %v69_v0  ;;  %v1039_v8 = vmul.f32 %v70_v1, %v70_v1 }
   0x3   :  { %26 = vst.msk [vmem:[#allocation2 + $0x18] sm:$0xff] %vm22_vm0, %v964_v3  ;;  %27 = vst.msk [vmem:[#allocation2 + $0x20] sm:$0xff] %vm22_vm0, %v964_v3  ;;  %v55_v9 = vld [vmem:[%s2221_s0] sm:$0xff]  ;;  %v56_v10 = vld [vmem:[%s2221_s0 + $0x8] sm:$0xff]  ;;  %v1053_v14 = vmul.f32 %v71_v2, %v71_v2  ;;  %v1055_v15 = vmul.f32 %v72_v4, %v72_v4  ;;  %v207_v26 = vsel %vm188_vm1, %v75_v6, 0.0  ;;  %v1074_v27 = vmul.f32 %v75_v6, %v75_v6 }
   0x4   :  { %28 = vst.msk [vmem:[#allocation2 + $0x28] sm:$0xff] %vm22_vm0, %v964_v3  ;;  %29 = vst.msk [vmem:[#allocation2 + $0x30] sm:$0xff] %vm22_vm0, %v964_v3  ;;  %v73_v11 = vld [vmem:[%s2221_s0 + $0x90] sm:$0xff]  ;;  %v74_v12 = vld [vmem:[%s2221_s0 + $0x98] sm:$0xff]  ;;  %v203_v13 = vadd.f32 %v202_v5, %v71_v2  ;;  %v183_v17 = vadd.f32 %v56_v10, %v55_v9  ;;  %v377_v22 = vmul.f32 %v55_v9, %v55_v9 }
   0x5   :  { %30 = vst.msk [vmem:[#allocation2 + $0x38] sm:$0xff] %vm22_vm0, %v964_v3  ;;  %31 = vst.msk [vmem:[#allocation2 + $0x40] sm:$0xff] %vm22_vm0, %v964_v3  ;;  %v57_v16 = vld [vmem:[%s2221_s0 + $0x10] sm:$0xff]  ;;  %v1060_v18 = vmul.f32 %v73_v11, %v73_v11  ;;  %v1062_v19 = vmul.f32 %v74_v12, %v74_v12  ;;  %v58_v20 = vld [vmem:[%s2221_s0 + $0x18] sm:$0xff]  ;;  %v378_v23 = vmul.f32 %v56_v10, %v56_v10 }
   0x6   :  { %32 = vst.msk [vmem:[#allocation2 + $0x48] sm:$0xff] %vm22_vm0, %v964_v3  ;;  %33 = vst.msk [vmem:[#allocation2 + $0x50] sm:$0xff] %vm22_vm0, %v964_v3  ;;  %v61_v21 = vld [vmem:[%s2221_s0 + $0x30] sm:$0xff]  ;;  %v76_v24 = vld [vmem:[%s2221_s0 + $0xa8] sm:$0xff]  ;;  %v204_v25 = vadd.f32 %v203_v13, %v72_v4  ;;  %v184_v29 = vadd.f32 %v183_v17, %v57_v16  ;;  %v1093_v34 = vmul.f32 %v57_v16, %v57_v16 }
   0x7   :  { %34 = vst.msk [vmem:[#allocation2 + $0x58] sm:$0xff] %vm22_vm0, %v964_v3  ;;  %35 = vst.msk [vmem:[#allocation2 + $0x60] sm:$0xff] %vm22_vm0, %v964_v3  ;;  %v59_v28 = vld [vmem:[%s2221_s0 + $0x20] sm:$0xff]  ;;  %v1082_v30 = vld [vmem:[%s2221_s0 + $0xb0] sm:$0xff]  ;;  %v189_v33 = vsel %vm188_vm1, %v61_v21, 0.0  ;;  %v1095_v35 = vmul.f32 %v58_v20, %v58_v20  ;;  %v1121_v46 = vmul.f32 %v61_v21, %v61_v21  ;;  %v489_v50 = vadd.f32 %v378_v23, %v377_v22 }
   0x8   :  { %36 = vst.msk [vmem:[#allocation2 + $0x68] sm:$0xff] %vm22_vm0, %v964_v3  ;;  %37 = vst.msk [vmem:[#allocation2 + $0x70] sm:$0xff] %vm22_vm0, %v964_v3  ;;  %v1087_v31 = vld [vmem:[%s2221_s0 + $0xb8] sm:$0xff]  ;;  %v60_v32 = vld [vmem:[%s2221_s0 + $0x28] sm:$0xff]  ;;  %v211_v38 = vadd.f32 %v1082_v30, %v76_v24  ;;  %v205_v39 = vadd.f32 %v204_v25, %v73_v11  ;;  %v185_v40 = vadd.f32 %v184_v29, %v58_v20 }
   0x9   :  { %38 = vst.msk [vmem:[#allocation2 + $0x78] sm:$0xff] %vm22_vm0, %v964_v3  ;;  %39 = vst.msk [vmem:[#allocation3] sm:$0xff] %vm22_vm0, %v964_v3  ;;  %v1100_v36 = vld [vmem:[%s2221_s0 + $0xc0] sm:$0xff]  ;;  %v1105_v37 = vld [vmem:[%s2221_s0 + $0xd8] sm:$0xff]  ;;  %v1108_v41 = vmul.f32 %v59_v28, %v59_v28  ;;  %v1110_v42 = vmul.f32 %v60_v32, %v60_v32  ;;  %v1173_v9 = vmul.f32 %v76_v24, %v76_v24 }
   0xa   :  { %40 = vst.msk [vmem:[#allocation3 + $0x8] sm:$0xff] %vm22_vm0, %v964_v3  ;;  %41 = vst.msk [vmem:[#allocation3 + $0x10] sm:$0xff] %vm22_vm0, %v964_v3  ;;  %v62_v43 = vld [vmem:[%s2221_s0 + $0x38] sm:$0xff]  ;;  %v63_v44 = vld [vmem:[%s2221_s0 + $0x40] sm:$0xff]  ;;  %v212_v48 = vadd.f32 %v211_v38, %v1087_v31  ;;  %v206_v51 = vadd.f32 %v205_v39, %v74_v12  ;;  %v186_v52 = vadd.f32 %v185_v40, %v59_v28  ;;  %v216_v60 = vsel %vm188_vm1, %v1105_v37, 0.0 }
   0xb   :  { %42 = vst.msk [vmem:[#allocation3 + $0x18] sm:$0xff] %vm22_vm0, %v964_v3  ;;  %43 = vst.msk [vmem:[#allocation3 + $0x20] sm:$0xff] %vm22_vm0, %v964_v3  ;;  %v64_v45 = vld [vmem:[%s2221_s0 + $0x48] sm:$0xff]  ;;  %v193_v49 = vadd.f32 %v63_v44, %v62_v43  ;;  %v65_v53 = vld [vmem:[%s2221_s0 + $0x50] sm:$0xff]  ;;  %v384_v56 = vmul.f32 %v62_v43, %v62_v43  ;;  %v385_v57 = vmul.f32 %v63_v44, %v63_v44 }
   0xc   :  { %44 = vst.msk [vmem:[#allocation3 + $0x28] sm:$0xff] %vm22_vm0, %v964_v3  ;;  %45 = vst.msk [vmem:[#allocation3 + $0x30] sm:$0xff] %vm22_vm0, %v964_v3  ;;  %v1126_v47 = vld [vmem:[%s2221_s0 + $0xc8] sm:$0xff]  ;;  %v1135_v54 = vld [vmem:[%s2221_s0 + $0x118] sm:$0xff]  ;;  %v213_v59 = vadd.f32 %v212_v48, %v1100_v36  ;;  %v208_v1 = vadd.f32 %v207_v26, %v206_v51  ;;  %v187_v2 = vadd.f32 %v186_v52, %v60_v32 }
   0xd   :  { %46 = vst.msk [vmem:[#allocation3 + $0x38] sm:$0xff] %vm22_vm0, %v964_v3  ;;  %47 = vst.msk [vmem:[#allocation3 + $0x40] sm:$0xff] %vm22_vm0, %v964_v3  ;;  %v1140_v55 = vld [vmem:[%s2221_s0 + $0x120] sm:$0xff]  ;;  %v1145_v58 = vld [vmem:[%s2221_s0 + $0xd0] sm:$0xff]  ;;  %v194_v62 = vadd.f32 %v193_v49, %v64_v45  ;;  %v386_v6 = vmul.f32 %v64_v45, %v64_v45  ;;  %v387_v20 = vmul.f32 %v65_v53, %v65_v53 }
   0xe   :  { %48 = vst.msk [vmem:[#allocation3 + $0x48] sm:$0xff] %vm22_vm0, %v964_v3  ;;  %49 = vst.msk [vmem:[#allocation3 + $0x50] sm:$0xff] %vm22_vm0, %v964_v3  ;;  %v68_v61 = vld [vmem:[%s2221_s0 + $0x68] sm:$0xff]  ;;  %v229_v0 = vadd.f32 %v1140_v55, %v1135_v54  ;;  %v1166_v4 = vld [vmem:[%s2221_s0 + $0x130] sm:$0xff]  ;;  %v214_v10 = vadd.f32 %v213_v59, %v1126_v47  ;;  %209 = vadd.xlane.f32.xlu1 %v208_v1  ;;  %v190_v21 = vadd.f32 %v189_v33, %v187_v2 }
   0xf   :  { %50 = vst.msk [vmem:[#allocation3 + $0x58] sm:$0xff] %vm22_vm0, %v964_v3  ;;  %51 = vst.msk [vmem:[#allocation3 + $0x60] sm:$0xff] %vm22_vm0, %v964_v3  ;;  %v1156_v63 = vld [vmem:[%s2221_s0 + $0x128] sm:$0xff]  ;;  %v1171_v5 = vld [vmem:[%s2221_s0 + $0xe0] sm:$0xff]  ;;  %v195_v11 = vadd.f32 %v194_v62, %v65_v53  ;;  %v198_v23 = vsel %vm188_vm1, %v68_v61, 0.0  ;;  %v498_v28 = vadd.f32 %v385_v57, %v384_v56  ;;  %v490_v1 = vadd.f32 %v489_v50, %v1093_v34 }
  0x10   :  { %52 = vst.msk [vmem:[#allocation3 + $0x68] sm:$0xff] %vm22_vm0, %v964_v3  ;;  %53 = vst.msk [vmem:[#allocation3 + $0x70] sm:$0xff] %vm22_vm0, %v964_v3  ;;  %v1179_v12 = vld [vmem:[%s2221_s0 + $0x148] sm:$0xff]  ;;  %v230_v13 = vadd.f32 %v229_v0, %v1156_v63  ;;  %v1190_v17 = vld [vmem:[%s2221_s0 + $0xf0] sm:$0xff]  ;;  %v215_v29 = vadd.f32 %v214_v10, %v1145_v58  ;;  %191 = vadd.xlane.f32.xlu0 %v190_v21  ;;  %v390_v50 = vmul.f32 %v68_v61, %v68_v61 }
  0x11   :  { %54 = vst.msk [vmem:[#allocation3 + $0x78] sm:$0xff] %vm22_vm0, %v964_v3  ;;  %v66_v3 = vld [vmem:[%s2221_s0 + $0x58] sm:$0xff]  ;;  %v1185_v16 = vld [vmem:[%s2221_s0 + $0xe8] sm:$0xff]  ;;  %v67_v22 = vld [vmem:[%s2221_s0 + $0x60] sm:$0xff]  ;;  %v234_v45 = vsel %vm188_vm1, %v1179_v12, 0.0  ;;  %v499_v52 = vadd.f32 %v498_v28, %v386_v6 }
  0x12   :  { %v1199_v24 = vld [vmem:[%s2221_s0 + $0x138] sm:$0xff]  ;;  %v220_v26 = vadd.f32 %v1185_v16, %v1171_v5  ;;  %v196_v32 = vadd.f32 %v195_v11, %v66_v3  ;;  %v231_v33 = vadd.f32 %v230_v13, %v1166_v4  ;;  %v1213_v38 = vld [vmem:[%s2221_s0 + $0x188] sm:$0xff]  ;;  %v1218_v39 = vld [vmem:[%s2221_s0 + $0x190] sm:$0xff]  ;;  %v388_v43 = vmul.f32 %v66_v3, %v66_v3 }
  0x13   :  { %v1204_v25 = vld [vmem:[%s2221_s0 + $0xf8] sm:$0xff]  ;;  %v1228_v44 = vld [vmem:[%s2221_s0 + $0x140] sm:$0xff]  ;;  %v247_v51 = vadd.f32 %v1218_v39, %v1213_v38  ;;  %v217_v53 = vadd.f32 %v216_v60, %v215_v29  ;;  %v1244_v59 = vld [vmem:[%s2221_s0 + $0x108] sm:$0xff]  ;;  %v500_v61 = vadd.f32 %v499_v52, %v387_v20  ;;  %v389_v20 = vmul.f32 %v67_v22, %v67_v22 }
  0x14   :  { %v1223_v40 = vld [vmem:[%s2221_s0 + $0x198] sm:$0xff]  ;;  %v1235_v48 = vld [vmem:[%s2221_s0 + $0x100] sm:$0xff]  ;;  %v221_v49 = vadd.f32 %v220_v26, %v1190_v17  ;;  %v197_v56 = vadd.f32 %v196_v32, %v67_v22  ;;  %v232_v57 = vadd.f32 %v231_v33, %v1199_v24  ;;  %v1254_v0 = vld [vmem:[%s2221_s0 + $0x150] sm:$0xff] }
  0x15   :  { %v1249_v62 = vld [vmem:[%s2221_s0 + $0x1a0] sm:$0xff]  ;;  %v1259_v60 = vld [vmem:[%s2221_s0 + $0x158] sm:$0xff]  ;;  %v1265_v2 = vld [vmem:[%s2221_s0 + $0x110] sm:$0xff]  ;;  %v248_v10 = vadd.f32 %v247_v51, %v1223_v40  ;;  %218 = vadd.xlane.f32.xlu1 %v217_v53 }
  0x16   :  { %2269 = vst [vmem:[#allocation4_spill] sm:$0xff] %v1259_v60  ;;  %v222_v3 = vadd.f32 %v221_v49, %v1204_v25  ;;  %v1271_v6 = vld [vmem:[%s2221_s0 + $0x1a8] sm:$0xff]  ;;  %v1277_v11 = vld [vmem:[%s2221_s0 + $0x160] sm:$0xff]  ;;  %v238_v34 = vadd.f32 %v1259_v60, %v1254_v0  ;;  %v199_v13 = vadd.f32 %v198_v23, %v197_v56  ;;  %v233_v21 = vadd.f32 %v232_v57, %v1228_v44  ;;  %v1285_v26 = vld [vmem:[%s2221_s0 + $0x1b0] sm:$0xff] }
  0x17   :  { %2270 = vst [vmem:[#allocation5_spill] sm:$0xff] %v1271_v6  ;;  %2271 = vst [vmem:[#allocation6_spill] sm:$0xff] %v1277_v11  ;;  %v1290_v28 = vld [vmem:[%s2221_s0 + $0x168] sm:$0xff]  ;;  %v1295_v29 = vld [vmem:[%s2221_s0 + $0x1f8] sm:$0xff]  ;;  %v491_v23 = vadd.f32 %v490_v1, %v1095_v35  ;;  %v249_v49 = vadd.f32 %v248_v10, %v1249_v62  ;;  %v225_v56 = vsel %vm188_vm1, %v1265_v2, 0.0 }
  0x18   :  { %2272 = vst [vmem:[#allocation7_spill] sm:$0xff] %v1290_v28  ;;  %2273 = vst [vmem:[#allocation8_spill] sm:$0xff] %v1295_v29  ;;  %v223_v32 = vadd.f32 %v222_v3, %v1235_v48  ;;  %v1302_v33 = vld [vmem:[%s2221_s0 + $0x1b8] sm:$0xff]  ;;  %v239_v51 = vadd.f32 %v238_v34, %v1277_v11  ;;  %v1309_v53 = vld [vmem:[%s2221_s0 + $0x200] sm:$0xff]  ;;  %200 = vadd.xlane.f32.xlu0 %v199_v13  ;;  %v235_v52 = vadd.f32 %v234_v45, %v233_v21 }
  0x19   :  { %2274 = vst [vmem:[#allocation9_spill] sm:$0xff] %v1302_v33  ;;  %2275 = vst [vmem:[#allocation10_spill] sm:$0xff] %v1309_v53  ;;  %v1314_v35 = vld [vmem:[%s2221_s0 + $0x208] sm:$0xff]  ;;  %v1321_v57 = vld [vmem:[%s2221_s0 + $0x170] sm:$0xff]  ;;  %v265_v22 = vadd.f32 %v1309_v53, %v1295_v29  ;;  %v501_v45 = vadd.f32 %v500_v61, %v388_v43  ;;  %v250_v34 = vadd.f32 %v249_v49, %v1271_v6 }
  0x1a   :  { %2276 = vst [vmem:[#allocation11_spill] sm:$0xff] %v1314_v35  ;;  %2277 = vst [vmem:[#allocation12_spill] sm:$0xff] %v1321_v57  ;;  %v1326_v1 = vld [vmem:[%s2221_s0 + $0x180] sm:$0xff]  ;;  %v1331_v3 = vld [vmem:[%s2221_s0 + $0x210] sm:$0xff]  ;;  %v224_v10 = vadd.f32 %v223_v32, %v1244_v59  ;;  %v240_v13 = vadd.f32 %v239_v51, %v1290_v28  ;;  %v492_v61 = vadd.f32 %v491_v23, %v1108_v41  ;;  %236 = vadd.xlane.f32.xlu1 %v235_v52 }
  0x1b   :  { %2278 = vst [vmem:[#allocation13_spill] sm:$0xff] %v1331_v3  ;;  %v1341_v21 = vld [vmem:[%s2221_s0 + $0x1c0] sm:$0xff]  ;;  %v1346_v11 = vld [vmem:[%s2221_s0 + $0x1c8] sm:$0xff]  ;;  %v1351_v43 = vld [vmem:[%s2221_s0 + $0x1d0] sm:$0xff]  ;;  %v252_v32 = vsel %vm188_vm1, %v1302_v33, 0.0  ;;  %v266_v41 = vadd.f32 %v265_v22, %v1314_v35  ;;  %v503_v52 = vsel %vm188_vm1, %v390_v50, 0.0  ;;  %v251_v28 = vadd.f32 %v250_v34, %v1285_v26 }
  0x1c   :  { %2279 = vst [vmem:[#allocation14_spill] sm:$0xff] %v1341_v21  ;;  %2280 = vst [vmem:[#allocation15_spill] sm:$0xff] %v1346_v11  ;;  %v1359_v49 = vld [vmem:[%s2221_s0 + $0x178] sm:$0xff]  ;;  %v1369_v53 = vld [vmem:[%s2221_s0 + $0x228] sm:$0xff]  ;;  %v256_v23 = vadd.f32 %v1346_v11, %v1341_v21  ;;  %v226_v29 = vadd.f32 %v225_v56, %v224_v10  ;;  %v241_v6 = vadd.f32 %v240_v13, %v1321_v57  ;;  %v243_v10 = vsel %vm188_vm1, %v1326_v1, 0.0 }
  0x1d   :  { %2281 = vst [vmem:[#allocation16_spill] sm:$0xff] %v1351_v43  ;;  %v1364_v51 = vld [vmem:[%s2221_s0 + $0x218] sm:$0xff]  ;;  %2283 = vst [vmem:[#allocation18_spill] sm:$0xff] %v1369_v53  ;;  %v1380_v60 = vld [vmem:[%s2221_s0 + $0x220] sm:$0xff]  ;;  %v502_v56 = vadd.f32 %v501_v45, %v389_v20  ;;  %v267_v34 = vadd.f32 %v266_v41, %v1331_v3  ;;  %v253_v41 = vadd.f32 %v252_v32, %v251_v28  ;;  %v270_v57 = vsel %vm188_vm1, %v1369_v53, 0.0 }
  0x1e   :  { %2282 = vst [vmem:[#allocation17_spill] sm:$0xff] %v1364_v51  ;;  %2284 = vst [vmem:[#allocation19_spill] sm:$0xff] %v1380_v60  ;;  %v1385_v33 = vld [vmem:[%s2221_s0 + $0x1d8] sm:$0xff]  ;;  %v1390_v22 = vld [vmem:[%s2221_s0 + $0x268] sm:$0xff]  ;;  %v257_v21 = vadd.f32 %v256_v23, %v1351_v43  ;;  %227 = vadd.xlane.f32.xlu0 %v226_v29  ;;  %v242_v3 = vadd.f32 %v241_v6, %v1359_v49  ;;  %v493_v6 = vadd.f32 %v492_v61, %v1110_v42 }
  0x1f   :  { %2285 = vst [vmem:[#allocation20_spill] sm:$0xff] %v1385_v33  ;;  %2286 = vst [vmem:[#allocation21_spill] sm:$0xff] %v1390_v22  ;;  %v1395_v50 = vld [vmem:[%s2221_s0 + $0x270] sm:$0xff]  ;;  %v1403_v13 = vld [vmem:[%s2221_s0 + $0x1e0] sm:$0xff]  ;;  %v268_v28 = vadd.f32 %v267_v34, %v1364_v51  ;;  %254 = vadd.xlane.f32.xlu1 %v253_v41 }
  0x20   :  { %2287 = vst [vmem:[#allocation22_spill] sm:$0xff] %v1395_v50  ;;  %2288 = vst [vmem:[#allocation23_spill] sm:$0xff] %v1403_v13  ;;  %v1408_v11 = vld [vmem:[%s2221_s0 + $0x1f0] sm:$0xff]  ;;  %v1414_v20 = vld [vmem:[%s2221_s0 + $0x278] sm:$0xff]  ;;  %v283_v45 = vadd.f32 %v1395_v50, %v1390_v22  ;;  %v258_v32 = vadd.f32 %v257_v21, %v1385_v33  ;;  %v494_v21 = vsel %vm188_vm1, %v1121_v46, 0.0  ;;  %v244_v61 = vadd.f32 %v243_v10, %v242_v3 }
  0x21   :  { %2289 = vst [vmem:[#allocation24_spill] sm:$0xff] %v1408_v11  ;;  %2290 = vst [vmem:[#allocation25_spill] sm:$0xff] %v1414_v20  ;;  %v1424_v35 = vld [vmem:[%s2221_s0 + $0x1e8] sm:$0xff]  ;;  %v1429_v23 = vld [vmem:[%s2221_s0 + $0x280] sm:$0xff]  ;;  %v261_v34 = vsel %vm188_vm1, %v1408_v11, 0.0  ;;  %v1476_v3 = vadd.f32 %v503_v52, %v502_v56  ;;  %v269_v10 = vadd.f32 %v268_v28, %v1380_v60  ;;  %v399_v56 = vmul.f32 %v1082_v30, %v1082_v30 }
  0x22   :  { %2291 = vst [vmem:[#allocation26_spill] sm:$0xff] %v1429_v23  ;;  %v1434_v29 = vld [vmem:[%s2221_s0 + $0x230] sm:$0xff]  ;;  %v1442_v50 = vld [vmem:[%s2221_s0 + $0x298] sm:$0xff]  ;;  %v284_v22 = vadd.f32 %v283_v45, %v1414_v20  ;;  %v1453_v42 = vld [vmem:[%s2221_s0 + $0x240] sm:$0xff]  ;;  %v259_v41 = vadd.f32 %v258_v32, %v1403_v13  ;;  %245 = vadd.xlane.f32.xlu0 %v244_v61  ;;  %v1513_v30 = vadd.f32 %v494_v21, %v493_v6 }
  0x23   :  { %2292 = vst [vmem:[#allocation27_spill] sm:$0xff] %v1434_v29  ;;  %2293 = vst [vmem:[#allocation28_spill] sm:$0xff] %v1442_v50  ;;  %v1448_v43 = vld [vmem:[%s2221_s0 + $0x238] sm:$0xff]  ;;  %v1462_v45 = vld [vmem:[%s2221_s0 + $0x288] sm:$0xff]  ;;  %v288_v28 = vsel %vm188_vm1, %v1442_v50, 0.0  ;;  %v271_v61 = vadd.f32 %v270_v57, %v269_v10  ;;  %v400_v57 = vmul.f32 %v1087_v31, %v1087_v31 }
  0x24   :  { %2294 = vst [vmem:[#allocation29_spill] sm:$0xff] %v1448_v43  ;;  %v1467_v20 = vld [vmem:[%s2221_s0 + $0x248] sm:$0xff]  ;;  %v1472_v33 = vld [vmem:[%s2221_s0 + $0x260] sm:$0xff]  ;;  %v274_v46 = vadd.f32 %v1448_v43, %v1434_v29  ;;  %v285_v11 = vadd.f32 %v284_v22, %v1429_v23  ;;  %v1484_v51 = vld [vmem:[%s2221_s0 + $0x2d8] sm:$0xff]  ;;  %v260_v23 = vadd.f32 %v259_v41, %v1424_v35 }
  0x25   :  { %2295 = vst [vmem:[#allocation30_spill] sm:$0xff] %v1467_v20  ;;  %2296 = vst [vmem:[#allocation31_spill] sm:$0xff] %v1472_v33  ;;  %v1489_v53 = vld [vmem:[%s2221_s0 + $0x2e0] sm:$0xff]  ;;  %v1494_v52 = vld [vmem:[%s2221_s0 + $0x2e8] sm:$0xff]  ;;  %272 = vadd.xlane.f32.xlu1 %v271_v61 }
  0x26   :  { %2297 = vst [vmem:[#allocation32_spill] sm:$0xff] %v1484_v51  ;;  %2298 = vst [vmem:[#allocation33_spill] sm:$0xff] %v1489_v53  ;;  %v1501_v22 = vld [vmem:[%s2221_s0 + $0x290] sm:$0xff]  ;;  %v275_v43 = vadd.f32 %v274_v46, %v1453_v42  ;;  %v301_v29 = vadd.f32 %v1489_v53, %v1484_v51  ;;  %v286_v13 = vadd.f32 %v285_v11, %v1462_v45  ;;  %v1525_v60 = vld [vmem:[%s2221_s0 + $0x2a0] sm:$0xff]  ;;  %v279_v46 = vsel %vm188_vm1, %v1472_v33, 0.0 }
  0x27   :  { %2299 = vst [vmem:[#allocation34_spill] sm:$0xff] %v1494_v52  ;;  %v1508_v32 = vld [vmem:[%s2221_s0 + $0x250] sm:$0xff]  ;;  %2302 = vst [vmem:[#allocation37_spill] sm:$0xff] %v1525_v60  ;;  %v1530_v6 = vld [vmem:[%s2221_s0 + $0x2a8] sm:$0xff] }
  0x28   :  { %2300 = vst [vmem:[#allocation35_spill] sm:$0xff] %v1508_v32  ;;  %v1520_v50 = vld [vmem:[%s2221_s0 + $0x2f0] sm:$0xff]  ;;  %2303 = vst [vmem:[#allocation38_spill] sm:$0xff] %v1530_v6  ;;  %v1537_v11 = vld [vmem:[%s2221_s0 + $0x258] sm:$0xff]  ;;  %v276_v21 = vadd.f32 %v275_v43, %v1467_v20  ;;  %v302_v41 = vadd.f32 %v301_v29, %v1494_v52  ;;  %v292_v53 = vadd.f32 %v1530_v6, %v1525_v60 }
  0x29   :  { %2301 = vst [vmem:[#allocation36_spill] sm:$0xff] %v1520_v50  ;;  %v1545_v10 = vld [vmem:[%s2221_s0 + $0x308] sm:$0xff]  ;;  %v1551_v31 = vld [vmem:[%s2221_s0 + $0x2b0] sm:$0xff]  ;;  %v262_v43 = vadd.f32 %v261_v34, %v260_v23  ;;  %v287_v51 = vadd.f32 %v286_v13, %v1501_v22  ;;  %v1559_v33 = vld [vmem:[%s2221_s0 + $0x2f8] sm:$0xff]  ;;  %v401_v23 = vmul.f32 %v1100_v36, %v1100_v36  ;;  %v516_v13 = vadd.f32 %v399_v56, %v1173_v9 }
  0x2a   :  { %2304 = vst [vmem:[#allocation39_spill] sm:$0xff] %v1545_v10  ;;  %2305 = vst [vmem:[#allocation40_spill] sm:$0xff] %v1551_v31  ;;  %v1564_v29 = vld [vmem:[%s2221_s0 + $0x2b8] sm:$0xff]  ;;  %v1569_v52 = vld [vmem:[%s2221_s0 + $0x348] sm:$0xff]  ;;  %v277_v34 = vadd.f32 %v276_v21, %v1508_v32  ;;  %v303_v6 = vadd.f32 %v302_v41, %v1520_v50  ;;  %v293_v60 = vadd.f32 %v292_v53, %v1551_v31  ;;  %v306_v21 = vsel %vm188_vm1, %v1545_v10, 0.0 }
  0x2b   :  { %2306 = vst [vmem:[#allocation41_spill] sm:$0xff] %v1559_v33  ;;  %2307 = vst [vmem:[#allocation42_spill] sm:$0xff] %v1564_v29  ;;  %v1578_v61 = vld [vmem:[%s2221_s0 + $0x300] sm:$0xff]  ;;  %v1585_v20 = vld [vmem:[%s2221_s0 + $0x350] sm:$0xff]  ;;  %v402_v9 = vmul.f32 %v1126_v47, %v1126_v47  ;;  %263 = vadd.xlane.f32.xlu0 %v262_v43  ;;  %v289_v56 = vadd.f32 %v288_v28, %v287_v51  ;;  %v517_v51 = vadd.f32 %v516_v13, %v400_v57 }
  0x2c   :  { %2308 = vst [vmem:[#allocation43_spill] sm:$0xff] %v1569_v52  ;;  %2309 = vst [vmem:[#allocation44_spill] sm:$0xff] %v1585_v20  ;;  %v1590_v36 = vld [vmem:[%s2221_s0 + $0x358] sm:$0xff]  ;;  %v1599_v53 = vld [vmem:[%s2221_s0 + $0x2c0] sm:$0xff]  ;;  %v319_v47 = vadd.f32 %v1585_v20, %v1569_v52  ;;  %v278_v28 = vadd.f32 %v277_v34, %v1537_v11  ;;  %v304_v43 = vadd.f32 %v303_v6, %v1559_v33 }
  0x2d   :  { %v1604_v41 = vld [vmem:[%s2221_s0 + $0x2d0] sm:$0xff]  ;;  %v1609_v31 = vld [vmem:[%s2221_s0 + $0x360] sm:$0xff]  ;;  %v294_v10 = vadd.f32 %v293_v60, %v1564_v29  ;;  %v1624_v32 = vld [vmem:[%s2221_s0 + $0x318] sm:$0xff]  ;;  %v404_v6 = vmul.f32 %v1105_v37, %v1105_v37  ;;  %290 = vadd.xlane.f32.xlu1 %v289_v56  ;;  %v518_v20 = vadd.f32 %v517_v51, %v401_v23  ;;  %v507_v52 = vadd.f32 %v1039_v8, %v1037_v7 }
  0x2e   :  { %v1619_v50 = vld [vmem:[%s2221_s0 + $0x310] sm:$0xff]  ;;  %2310 = vst [vmem:[#allocation45_spill] sm:$0xff] %v1624_v32  ;;  %v1629_v57 = vld [vmem:[%s2221_s0 + $0x320] sm:$0xff]  ;;  %v1636_v60 = vld [vmem:[%s2221_s0 + $0x2c8] sm:$0xff]  ;;  %v320_v13 = vadd.f32 %v319_v47, %v1590_v36  ;;  %v280_v29 = vadd.f32 %v279_v46, %v278_v28  ;;  %v305_v33 = vadd.f32 %v304_v43, %v1578_v61  ;;  %v403_v23 = vmul.f32 %v1145_v58, %v1145_v58 }
  0x2f   :  { %2311 = vst [vmem:[#allocation46_spill] sm:$0xff] %v1629_v57  ;;  %v310_v34 = vadd.f32 %v1624_v32, %v1619_v50  ;;  %v295_v37 = vadd.f32 %v294_v10, %v1599_v53  ;;  %v1648_v56 = vld [vmem:[%s2221_s0 + $0x368] sm:$0xff]  ;;  %v297_v7 = vsel %vm188_vm1, %v1604_v41, 0.0  ;;  %v1662_v8 = vld [vmem:[%s2221_s0 + $0x378] sm:$0xff]  ;;  %v519_v51 = vadd.f32 %v518_v20, %v402_v9  ;;  %v1670_v58 = vld [vmem:[%s2221_s0 + $0x370] sm:$0xff] }
  0x30   :  { %v1653_v47 = vld [vmem:[%s2221_s0 + $0x328] sm:$0xff]  ;;  %v321_v46 = vadd.f32 %v320_v13, %v1609_v31  ;;  %281 = vadd.xlane.f32.xlu0 %v280_v29  ;;  %v307_v28 = vadd.f32 %v306_v21, %v305_v33  ;;  %v1675_v32 = vld [vmem:[%s2221_s0 + $0x330] sm:$0xff]  ;;  %v1680_v13 = vld [vmem:[%s2221_s0 + $0x340] sm:$0xff]  ;;  %v508_v20 = vadd.f32 %v507_v52, %v1053_v14  ;;  %v412_v33 = vmul.f32 %v1135_v54, %v1135_v54 }
  0x31   :  { %v311_v10 = vadd.f32 %v310_v34, %v1629_v57  ;;  %v296_v43 = vadd.f32 %v295_v37, %v1636_v60  ;;  %v521_v21 = vsel %vm188_vm1, %v404_v6, 0.0  ;;  %v413_v34 = vmul.f32 %v1140_v55, %v1140_v55  ;;  %v1695_v14 = vld [vmem:[%s2221_s0 + $0x338] sm:$0xff] }
  0x32   :  { %v322_v29 = vadd.f32 %v321_v46, %v1648_v56  ;;  %308 = vadd.xlane.f32.xlu1 %v307_v28  ;;  %v324_v57 = vsel %vm188_vm1, %v1662_v8, 0.0  ;;  %v509_v54 = vadd.f32 %v508_v20, %v1055_v15  ;;  %v414_v52 = vmul.f32 %v1156_v63, %v1156_v63 }
  0x33   :  { %v312_v9 = vadd.f32 %v311_v10, %v1653_v47  ;;  %v298_v37 = vadd.f32 %v297_v7, %v296_v43  ;;  %v315_v55 = vsel %vm188_vm1, %v1680_v13, 0.0  ;;  %v520_v7 = vadd.f32 %v519_v51, %v403_v23 }
  0x34   :  { %v323_v6 = vadd.f32 %v322_v29, %v1670_v58  ;;  %v510_v10 = vadd.f32 %v509_v54, %v1060_v18  ;;  %v415_v28 = vmul.f32 %v1166_v4, %v1166_v4  ;;  %v418_v15 = vmul.f32 %v1179_v12, %v1179_v12 }
  0x35   :  { %v313_v46 = vadd.f32 %v312_v9, %v1675_v32  ;;  %299 = vadd.xlane.f32.xlu0 %v298_v37  ;;  %v534_v43 = vadd.f32 %v413_v34, %v412_v33  ;;  %v405_v29 = vmul.f32 %v1171_v5, %v1171_v5  ;;  %v406_v9 = vmul.f32 %v1185_v16, %v1185_v16 }
  0x36   :  { %v325_v20 = vadd.f32 %v324_v57, %v323_v6  ;;  %v512_v23 = vsel %vm188_vm1, %v1074_v27, 0.0  ;;  %v416_v18 = vmul.f32 %v1199_v24, %v1199_v24  ;;  %v407_v12 = vmul.f32 %v1190_v17, %v1190_v17 }
  0x37   :  { %v314_v63 = vadd.f32 %v313_v46, %v1695_v14  ;;  %v535_v4 = vadd.f32 %v534_v43, %v414_v52  ;;  %v522_v51 = vadd.f32 %v521_v21, %v520_v7  ;;  %v511_v33 = vadd.f32 %v510_v10, %v1062_v19 }
  0x38   :  { %326 = vadd.xlane.f32.xlu1 %v325_v20  ;;  %v417_v5 = vmul.f32 %v1228_v44, %v1228_v44  ;;  %v539_v16 = vsel %vm188_vm1, %v418_v15, 0.0  ;;  %v408_v27 = vmul.f32 %v1204_v25, %v1204_v25  ;;  %v525_v37 = vadd.f32 %v406_v9, %v405_v29  ;;  %v2315_v15 = vld [vmem:[#allocation6_spill] sm:$0xff]  ;;  %v2316_v29 = vld [vmem:[#allocation7_spill] sm:$0xff] }
  0x39   :  { %v316_v57 = vadd.f32 %v315_v55, %v314_v63  ;;  %v536_v34 = vadd.f32 %v535_v4, %v415_v28  ;;  %v411_v24 = vmul.f32 %v1265_v2, %v1265_v2  ;;  %v426_v17 = vmul.f32 %v1213_v38, %v1213_v38  ;;  %v2312_v55 = vld [vmem:[#allocation9_spill] sm:$0xff] }
  0x3a   :  { %v427_v19 = vmul.f32 %v1218_v39, %v1218_v39  ;;  %v428_v44 = vmul.f32 %v1223_v40, %v1223_v40  ;;  %v409_v54 = vmul.f32 %v1235_v48, %v1235_v48  ;;  %v410_v25 = vmul.f32 %v1244_v59, %v1244_v59  ;;  %v2313_v48 = vld [vmem:[#allocation4_spill] sm:$0xff] }
  0x3b   :  { %317 = vadd.xlane.f32.xlu0 %v316_v57  ;;  %v537_v21 = vadd.f32 %v536_v34, %v416_v18  ;;  %v526_v52 = vadd.f32 %v525_v37, %v407_v12  ;;  %v513_v2 = vadd.f32 %v512_v23, %v511_v33  ;;  %v429_v38 = vmul.f32 %v1249_v62, %v1249_v62  ;;  %v2317_v18 = vld [vmem:[#allocation8_spill] sm:$0xff]  ;;  %v2318_v12 = vld [vmem:[#allocation10_spill] sm:$0xff] }
  0x3c   :  { %505 = vadd.xlane.f32.xlu1 %v1476_v3  ;;  %v552_v6 = vadd.f32 %v427_v19, %v426_v17  ;;  %v419_v39 = vmul.f32 %v1254_v0, %v1254_v0  ;;  %v432_v7 = vmul.f32 %v2312_v55, %v2312_v55  ;;  %v420_v10 = vmul.f32 %v2313_v48, %v2313_v48  ;;  %v2314_v3 = vld [vmem:[#allocation5_spill] sm:$0xff]  ;;  %v2326_v48 = vld [vmem:[#allocation16_spill] sm:$0xff] }
  0x3d   :  { %v538_v46 = vadd.f32 %v537_v21, %v417_v5  ;;  %v527_v40 = vadd.f32 %v526_v52, %v408_v27  ;;  %v530_v59 = vsel %vm188_vm1, %v411_v24, 0.0  ;;  %v430_v28 = vmul.f32 %v2314_v3, %v2314_v3 }
  0x3e   :  { %v553_v62 = vadd.f32 %v552_v6, %v428_v44  ;;  %v421_v43 = vmul.f32 %v2315_v15, %v2315_v15  ;;  %v431_v63 = vmul.f32 %v1285_v26, %v1285_v26  ;;  %v422_v9 = vmul.f32 %v2316_v29, %v2316_v29  ;;  %v2321_v44 = vld [vmem:[#allocation13_spill] sm:$0xff]  ;;  %v2328_v15 = vld [vmem:[#allocation20_spill] sm:$0xff] }
  0x3f   :  { %496 = vadd.xlane.f32.xlu0 %v1513_v30  ;;  %v540_v0 = vadd.f32 %v539_v16, %v538_v46  ;;  %v528_v20 = vadd.f32 %v527_v40, %v409_v54  ;;  %v543_v30 = vadd.f32 %v420_v10, %v419_v39  ;;  %v440_v4 = vmul.f32 %v2317_v18, %v2317_v18  ;;  %v2319_v16 = vld [vmem:[#allocation11_spill] sm:$0xff]  ;;  %v2325_v40 = vld [vmem:[#allocation17_spill] sm:$0xff] }
  0x40   :  { %523 = vadd.xlane.f32.xlu1 %v522_v51  ;;  %v554_v23 = vadd.f32 %v553_v62, %v429_v38  ;;  %v441_v57 = vmul.f32 %v2318_v12, %v2318_v12  ;;  %v557_v5 = vsel %vm188_vm1, %v432_v7, 0.0  ;;  %v425_v34 = vmul.f32 %v1326_v1, %v1326_v1  ;;  %v2320_v51 = vld [vmem:[#allocation12_spill] sm:$0xff]  ;;  %v2324_v39 = vld [vmem:[#allocation15_spill] sm:$0xff] }
  0x41   :  { %v529_v33 = vadd.f32 %v528_v20, %v410_v25  ;;  %v442_v26 = vmul.f32 %v2319_v16, %v2319_v16  ;;  %v423_v37 = vmul.f32 %v2320_v51, %v2320_v51  ;;  %v424_v24 = vmul.f32 %v1359_v49, %v1359_v49  ;;  %v2322_v25 = vld [vmem:[#allocation14_spill] sm:$0xff] }
  0x42   :  { %v555_v27 = vadd.f32 %v554_v23, %v430_v28  ;;  %v544_v17 = vadd.f32 %v543_v30, %v421_v43  ;;  %v443_v21 = vmul.f32 %v2321_v44, %v2321_v44  ;;  %v570_v54 = vadd.f32 %v441_v57, %v440_v4  ;;  %v2327_v28 = vld [vmem:[#allocation19_spill] sm:$0xff]  ;;  %v2331_v4 = vld [vmem:[#allocation24_spill] sm:$0xff]  ;;  %v2332_v57 = vld [vmem:[#allocation25_spill] sm:$0xff] }
  0x43   :  { %514 = vadd.xlane.f32.xlu0 %v513_v2  ;;  %v531_v19 = vadd.f32 %v530_v59, %v529_v33  ;;  %v433_v1 = vmul.f32 %v2322_v25, %v2322_v25  ;;  %v2323_v2 = vld [vmem:[#allocation18_spill] sm:$0xff]  ;;  %v434_v46 = vmul.f32 %v2324_v39, %v2324_v39  ;;  %v548_v49 = vsel %vm188_vm1, %v425_v34, 0.0  ;;  %v2333_v34 = vld [vmem:[#allocation23_spill] sm:$0xff]  ;;  %v2336_v25 = vld [vmem:[#allocation28_spill] sm:$0xff] }
  0x44   :  { %541 = vadd.xlane.f32.xlu1 %v540_v0  ;;  %v556_v52 = vadd.f32 %v555_v27, %v431_v63  ;;  %v545_v38 = vadd.f32 %v544_v17, %v422_v9  ;;  %v446_v6 = vmul.f32 %v2323_v2, %v2323_v2  ;;  %v444_v55 = vmul.f32 %v2325_v40, %v2325_v40  ;;  %v2329_v63 = vld [vmem:[#allocation21_spill] sm:$0xff]  ;;  %v2330_v9 = vld [vmem:[#allocation22_spill] sm:$0xff] }
  0x45   :  { %v571_v7 = vadd.f32 %v570_v54, %v442_v26  ;;  %v435_v10 = vmul.f32 %v2326_v48, %v2326_v48  ;;  %v445_v62 = vmul.f32 %v2327_v28, %v2327_v28  ;;  %v436_v43 = vmul.f32 %v2328_v15, %v2328_v15  ;;  %v2340_v28 = vld [vmem:[#allocation33_spill] sm:$0xff]  ;;  %v2341_v15 = vld [vmem:[#allocation31_spill] sm:$0xff] }
  0x46   :  { %v558_v59 = vadd.f32 %v557_v5, %v556_v52  ;;  %v546_v3 = vadd.f32 %v545_v38, %v423_v37  ;;  %v561_v20 = vadd.f32 %v434_v46, %v433_v1  ;;  %v454_v29 = vmul.f32 %v2329_v63, %v2329_v63  ;;  %v2334_v37 = vld [vmem:[#allocation26_spill] sm:$0xff]  ;;  %v2337_v52 = vld [vmem:[#allocation29_spill] sm:$0xff]  ;;  %v2343_v63 = vld [vmem:[#allocation35_spill] sm:$0xff] }
  0x47   :  { %532 = vadd.xlane.f32.xlu0 %v531_v19  ;;  %v572_v0 = vadd.f32 %v571_v7, %v443_v21  ;;  %v455_v23 = vmul.f32 %v2330_v9, %v2330_v9  ;;  %v575_v18 = vsel %vm188_vm1, %v446_v6, 0.0  ;;  %v439_v12 = vmul.f32 %v2331_v4, %v2331_v4  ;;  %v2335_v19 = vld [vmem:[#allocation27_spill] sm:$0xff] }
  0x48   :  { %559 = vadd.xlane.f32.xlu1 %v558_v59  ;;  %v547_v30 = vadd.f32 %v546_v3, %v424_v24  ;;  %v456_v33 = vmul.f32 %v2332_v57, %v2332_v57  ;;  %v437_v16 = vmul.f32 %v2333_v34, %v2333_v34  ;;  %v438_v26 = vmul.f32 %v1424_v35, %v1424_v35  ;;  %v2339_v59 = vld [vmem:[#allocation32_spill] sm:$0xff]  ;;  %v2345_v57 = vld [vmem:[#allocation37_spill] sm:$0xff] }
  0x49   :  { %v573_v5 = vadd.f32 %v572_v0, %v444_v55  ;;  %v562_v27 = vadd.f32 %v561_v20, %v435_v10  ;;  %v457_v24 = vmul.f32 %v2334_v37, %v2334_v37  ;;  %v588_v17 = vadd.f32 %v455_v23, %v454_v29  ;;  %v2338_v55 = vld [vmem:[#allocation30_spill] sm:$0xff]  ;;  %v2348_v37 = vld [vmem:[#allocation41_spill] sm:$0xff] }
  0x4a   :  { %v549_v51 = vadd.f32 %v548_v49, %v547_v30  ;;  %v447_v44 = vmul.f32 %v2335_v19, %v2335_v19  ;;  %v460_v1 = vmul.f32 %v2336_v25, %v2336_v25  ;;  %v448_v38 = vmul.f32 %v2337_v52, %v2337_v52  ;;  %v2342_v0 = vld [vmem:[#allocation34_spill] sm:$0xff]  ;;  %v2349_v19 = vld [vmem:[#allocation40_spill] sm:$0xff] }
  0x4b   :  { %v574_v21 = vadd.f32 %v573_v5, %v445_v62  ;;  %v563_v54 = vadd.f32 %v562_v27, %v436_v43  ;;  %v566_v35 = vsel %vm188_vm1, %v439_v12, 0.0  ;;  %v458_v2 = vmul.f32 %v1462_v45, %v1462_v45  ;;  %v2347_v27 = vld [vmem:[#allocation38_spill] sm:$0xff] }
  0x4c   :  { %550 = vadd.xlane.f32.xlu0 %v549_v51  ;;  %v589_v6 = vadd.f32 %v588_v17, %v456_v33  ;;  %v449_v39 = vmul.f32 %v1453_v42, %v1453_v42  ;;  %v459_v40 = vmul.f32 %v1501_v22, %v1501_v22  ;;  %v450_v7 = vmul.f32 %v2338_v55, %v2338_v55 }
  0x4d   :  { %v576_v46 = vadd.f32 %v575_v18, %v574_v21  ;;  %v564_v49 = vadd.f32 %v563_v54, %v437_v16  ;;  %v579_v10 = vadd.f32 %v448_v38, %v447_v44  ;;  %v468_v3 = vmul.f32 %v2339_v59, %v2339_v59  ;;  %v2344_v18 = vld [vmem:[#allocation36_spill] sm:$0xff]  ;;  %v2346_v16 = vld [vmem:[#allocation39_spill] sm:$0xff] }
  0x4e   :  { %v590_v48 = vadd.f32 %v589_v6, %v457_v24  ;;  %v469_v45 = vmul.f32 %v2340_v28, %v2340_v28  ;;  %v593_v42 = vsel %vm188_vm1, %v460_v1, 0.0  ;;  %v453_v43 = vmul.f32 %v2341_v15, %v2341_v15  ;;  %v2350_v1 = vld [vmem:[#allocation42_spill] sm:$0xff]  ;;  %v2353_v15 = vld [vmem:[#allocation45_spill] sm:$0xff] }
  0x4f   :  { %577 = vadd.xlane.f32.xlu1 %v576_v46  ;;  %v565_v62 = vadd.f32 %v564_v49, %v438_v26  ;;  %v470_v22 = vmul.f32 %v2342_v0, %v2342_v0  ;;  %v451_v29 = vmul.f32 %v2343_v63, %v2343_v63  ;;  %v452_v9 = vmul.f32 %v1537_v11, %v1537_v11  ;;  %v2354_v0 = vld [vmem:[#allocation46_spill] sm:$0xff] }
  0x50   :  { %v591_v20 = vadd.f32 %v590_v48, %v458_v2  ;;  %v580_v23 = vadd.f32 %v579_v10, %v449_v39  ;;  %v471_v4 = vmul.f32 %v2344_v18, %v2344_v18  ;;  %v606_v12 = vadd.f32 %v469_v45, %v468_v3  ;;  %v2351_v2 = vld [vmem:[#allocation43_spill] sm:$0xff]  ;;  %v2352_v39 = vld [vmem:[#allocation44_spill] sm:$0xff] }
  0x51   :  { %v567_v30 = vadd.f32 %v566_v35, %v565_v62  ;;  %v461_v33 = vmul.f32 %v2345_v57, %v2345_v57  ;;  %v474_v26 = vmul.f32 %v2346_v16, %v2346_v16  ;;  %v462_v51 = vmul.f32 %v2347_v27, %v2347_v27  ;;  %v169_v27 = vld [vmem:[#allocation2 + $0x10] sm:$0xff] }
  0x52   :  { %v592_v5 = vadd.f32 %v591_v20, %v459_v40  ;;  %v581_v34 = vadd.f32 %v580_v23, %v450_v7  ;;  %v584_v11 = vsel %vm188_vm1, %v453_v43, 0.0  ;;  %v472_v24 = vmul.f32 %v2348_v37, %v2348_v37 }
  0x53   :  { %568 = vadd.xlane.f32.xlu0 %v567_v30  ;;  %v607_v17 = vadd.f32 %v606_v12, %v470_v22  ;;  %v463_v44 = vmul.f32 %v2349_v19, %v2349_v19  ;;  %v473_v25 = vmul.f32 %v1578_v61, %v1578_v61  ;;  %v464_v52 = vmul.f32 %v2350_v1, %v2350_v1  ;;  %v168_v19 = vld [vmem:[#allocation2 + $0x8] sm:$0xff] }
  0x54   :  { %v594_v21 = vadd.f32 %v593_v42, %v592_v5  ;;  %v582_v54 = vadd.f32 %v581_v34, %v451_v29  ;;  %v597_v35 = vadd.f32 %v462_v51, %v461_v33  ;;  %v482_v6 = vmul.f32 %v2351_v2, %v2351_v2  ;;  %v174_v2 = vld [vmem:[#allocation2 + $0x38] sm:$0xff] }
  0x55   :  { %v608_v38 = vadd.f32 %v607_v17, %v471_v4  ;;  %v483_v46 = vmul.f32 %v2352_v39, %v2352_v39  ;;  %v611_v40 = vsel %vm188_vm1, %v474_v26, 0.0  ;;  %v484_v55 = vmul.f32 %v1590_v36, %v1590_v36  ;;  %v170_v17 = vld [vmem:[#allocation2 + $0x18] sm:$0xff] }
  0x56   :  { %595 = vadd.xlane.f32.xlu1 %v594_v21  ;;  %v583_v49 = vadd.f32 %v582_v54, %v452_v9  ;;  %v465_v61 = vmul.f32 %v1599_v53, %v1599_v53  ;;  %v467_v48 = vmul.f32 %v1604_v41, %v1604_v41  ;;  %v598_v10 = vadd.f32 %v597_v35, %v463_v44  ;;  %v172_v54 = vld [vmem:[#allocation2 + $0x28] sm:$0xff] }
  0x57   :  { %v609_v7 = vadd.f32 %v608_v38, %v472_v24  ;;  %v485_v3 = vmul.f32 %v1609_v31, %v1609_v31  ;;  %v624_v28 = vadd.f32 %v483_v46, %v482_v6  ;;  %v475_v45 = vmul.f32 %v1619_v50, %v1619_v50  ;;  %v171_v38 = vld [vmem:[#allocation2 + $0x20] sm:$0xff]  ;;  %v173_v46 = vld [vmem:[#allocation2 + $0x30] sm:$0xff] }
  0x58   :  { %v585_v59 = vadd.f32 %v584_v11, %v583_v49  ;;  %v466_v36 = vmul.f32 %v1636_v60, %v1636_v60  ;;  %v599_v42 = vadd.f32 %v598_v10, %v464_v52  ;;  %v476_v53 = vmul.f32 %v2353_v15, %v2353_v15  ;;  %v167_v11 = vld [vmem:[#allocation2] sm:$0xff]  ;;  %v180_v15 = vld [vmem:[#allocation2 + $0x68] sm:$0xff] }
  0x59   :  { %v610_v62 = vadd.f32 %v609_v7, %v473_v25  ;;  %v486_v41 = vmul.f32 %v1648_v56, %v1648_v56  ;;  %v625_v43 = vadd.f32 %v624_v28, %v484_v55  ;;  %v477_v31 = vmul.f32 %v2354_v0, %v2354_v0  ;;  %v176_v7 = vld [vmem:[#allocation2 + $0x48] sm:$0xff] }
  0x5a   :  { %586 = vadd.xlane.f32.xlu0 %v585_v59  ;;  %v600_v20 = vadd.f32 %v599_v42, %v465_v61  ;;  %v602_v50 = vsel %vm188_vm1, %v467_v48, 0.0  ;;  %v488_v63 = vmul.f32 %v1662_v8, %v1662_v8  ;;  %v487_v60 = vmul.f32 %v1670_v58, %v1670_v58  ;;  %v175_v48 = vld [vmem:[#allocation2 + $0x40] sm:$0xff] }
  0x5b   :  { %v612_v22 = vadd.f32 %v611_v40, %v610_v62  ;;  %v626_v29 = vadd.f32 %v625_v43, %v485_v3  ;;  %v478_v9 = vmul.f32 %v1653_v47, %v1653_v47  ;;  %v615_v23 = vadd.f32 %v476_v53, %v475_v45  ;;  %v178_v3 = vld [vmem:[#allocation2 + $0x58] sm:$0xff]  ;;  %v179_v43 = vld [vmem:[#allocation2 + $0x60] sm:$0xff] }
  0x5c   :  { %v601_v56 = vadd.f32 %v600_v20, %v466_v36  ;;  %v479_v18 = vmul.f32 %v1675_v32, %v1675_v32  ;;  %v629_v57 = vsel %vm188_vm1, %v488_v63, 0.0  ;;  %v481_v8 = vmul.f32 %v1680_v13, %v1680_v13  ;;  %v177_v36 = vld [vmem:[#allocation2 + $0x50] sm:$0xff]  ;;  %v182_v20 = vld [vmem:[#allocation2 + $0x78] sm:$0xff] }
  0x5d   :  { %613 = vadd.xlane.f32.xlu1 %v612_v22  ;;  %v627_v30 = vadd.f32 %v626_v29, %v486_v41  ;;  %v616_v4 = vadd.f32 %v615_v23, %v477_v31  ;;  %v480_v58 = vmul.f32 %v1695_v14, %v1695_v14  ;;  %v181_v63 = vld [vmem:[#allocation2 + $0x70] sm:$0xff] }
  0x5e   :  { %v603_v12 = vadd.f32 %v602_v50, %v601_v56  ;;  %v620_v16 = vsel %vm188_vm1, %v481_v8, 0.0 }
  0x5f   :  { %v628_v33 = vadd.f32 %v627_v30, %v487_v60  ;;  %v617_v5 = vadd.f32 %v616_v4, %v478_v9  ;;  %v362_v9 = vld [vmem:[#allocation3 + $0x8] sm:$0xff]  ;;  %v361_v30 = vld [vmem:[#allocation3] sm:$0xff] }
  0x60   :  { %604 = vadd.xlane.f32.xlu0 %v603_v12  ;;  %v364_v12 = vld [vmem:[#allocation3 + $0x18] sm:$0xff] }
  0x61   :  { %v630_v47 = vadd.f32 %v629_v57, %v628_v33  ;;  %v618_v34 = vadd.f32 %v617_v5, %v479_v18 }
  0x63   :  { %631 = vadd.xlane.f32.xlu1 %v630_v47  ;;  %v619_v26 = vadd.f32 %v618_v34, %v480_v58  ;;  %v363_v58 = vld [vmem:[#allocation3 + $0x10] sm:$0xff] }
  0x65   :  { %v621_v32 = vadd.f32 %v620_v16, %v619_v26  ;;  %v366_v16 = vld [vmem:[#allocation3 + $0x28] sm:$0xff] }
  0x67   :  { %622 = vadd.xlane.f32.xlu0 %v621_v32 }
  0x97   :  { %v210_v51 = vpop.xlane.xlu1 %209 }
  0x98   :  { %v330_v37 = vadd.f32 %v210_v51, %v169_v27 }
  0x99   :  { %v192_v24 = vpop.xlane.xlu0 %191 }
  0x9a   :  { %347 = vst.msk [vmem:[#allocation2 + $0x10] sm:$0xff] %vm22_vm0, %v330_v37  ;;  %v328_v13 = vadd.f32 %v192_v24, %v167_v11  ;;  %v365_v11 = vld [vmem:[#allocation3 + $0x20] sm:$0xff] }
  0x9c   :  { %345 = vst.msk [vmem:[#allocation2] sm:$0xff] %vm22_vm0, %v328_v13 }
  0x9e   :  { %v219_v14 = vpop.xlane.xlu1 %218 }
  0x9f   :  { %v331_v44 = vadd.f32 %v219_v14, %v170_v17 }
  0xa1   :  { %v201_v21 = vpop.xlane.xlu0 %200  ;;  %348 = vst.msk [vmem:[#allocation2 + $0x18] sm:$0xff] %vm22_vm0, %v331_v44  ;;  %v669_v37 = vld [vmem:[#allocation2 + $0x10] sm:$0xff] }
  0xa2   :  { %v329_v25 = vadd.f32 %v201_v21, %v168_v19  ;;  %v368_v19 = vld [vmem:[#allocation3 + $0x38] sm:$0xff] }
  0xa3   :  { %v237_v1 = vpop.xlane.xlu1 %236  ;;  %v667_v47 = vld [vmem:[#allocation2] sm:$0xff] }
  0xa4   :  { %346 = vst.msk [vmem:[#allocation2 + $0x8] sm:$0xff] %vm22_vm0, %v329_v25  ;;  %v333_v52 = vadd.f32 %v237_v1, %v172_v54  ;;  %v1906_v24 = vmul.f32 0.0012755102, %v667_v47  ;;  %v1914_v1 = vmul.f32 0.0012755102, %v669_v37 }
  0xa6   :  { %350 = vst.msk [vmem:[#allocation2 + $0x28] sm:$0xff] %vm22_vm0, %v333_v52 }
  0xa7   :  { %v228_v35 = vpop.xlane.xlu0 %227 }
  0xa8   :  { %v332_v6 = vadd.f32 %v228_v35, %v171_v38  ;;  %v255_v39 = vpop.xlane.xlu1 %254  ;;  %v670_v27 = vld [vmem:[#allocation2 + $0x18] sm:$0xff]  ;;  %v731_v35 = vmul.f32 %v1906_v24, %v1906_v24 }
  0xa9   :  { %v335_v49 = vadd.f32 %v255_v39, %v174_v2  ;;  %v1909_v44 = vmul.f32 0.0012755102, %v670_v27 }
  0xaa   :  { %349 = vst.msk [vmem:[#allocation2 + $0x20] sm:$0xff] %vm22_vm0, %v332_v6 }
  0xab   :  { %v246_v40 = vpop.xlane.xlu0 %245  ;;  %352 = vst.msk [vmem:[#allocation2 + $0x38] sm:$0xff] %vm22_vm0, %v335_v49  ;;  %v668_v8 = vld [vmem:[#allocation2 + $0x8] sm:$0xff] }
  0xac   :  { %v334_v55 = vadd.f32 %v246_v40, %v173_v46  ;;  %v1903_v26 = vmul.f32 0.0012755102, %v668_v8 }
  0xad   :  { %v672_v2 = vld [vmem:[#allocation2 + $0x28] sm:$0xff] }
  0xae   :  { %351 = vst.msk [vmem:[#allocation2 + $0x30] sm:$0xff] %vm22_vm0, %v334_v55  ;;  %v273_v61 = vpop.xlane.xlu1 %272  ;;  %v732_v21 = vmul.f32 %v1903_v26, %v1903_v26  ;;  %v734_v55 = vmul.f32 %v1909_v44, %v1909_v44 }
  0xaf   :  { %v337_v10 = vadd.f32 %v273_v61, %v176_v7 }
  0xb1   :  { %354 = vst.msk [vmem:[#allocation2 + $0x48] sm:$0xff] %vm22_vm0, %v337_v10  ;;  %v671_v6 = vld [vmem:[#allocation2 + $0x20] sm:$0xff] }
  0xb2   :  { %v674_v7 = vld [vmem:[#allocation2 + $0x38] sm:$0xff] }
  0xb4   :  { %v264_v59 = vpop.xlane.xlu0 %263 }
  0xb5   :  { %v336_v28 = vadd.f32 %v264_v59, %v175_v48  ;;  %v367_v59 = vld [vmem:[#allocation3 + $0x30] sm:$0xff] }
  0xb6   :  { %v291_v45 = vpop.xlane.xlu1 %290 }
  0xb7   :  { %353 = vst.msk [vmem:[#allocation2 + $0x40] sm:$0xff] %vm22_vm0, %v336_v28  ;;  %v339_v62 = vadd.f32 %v291_v45, %v178_v3  ;;  %v733_v3 = vmul.f32 %v1914_v1, %v1914_v1  ;;  %v1924_v28 = vmul.f32 0.0012755102, %v672_v2  ;;  %v1926_v45 = vmul.f32 0.0012755102, %v671_v6 }
  0xb8   :  { %v676_v47 = vld [vmem:[#allocation2 + $0x48] sm:$0xff] }
  0xb9   :  { %356 = vst.msk [vmem:[#allocation2 + $0x58] sm:$0xff] %vm22_vm0, %v339_v62  ;;  %v282_v42 = vpop.xlane.xlu0 %281 }
  0xba   :  { %v338_v53 = vadd.f32 %v282_v42, %v177_v36 }
  0xbb   :  { %v309_v41 = vpop.xlane.xlu1 %308 }
  0xbc   :  { %355 = vst.msk [vmem:[#allocation2 + $0x50] sm:$0xff] %vm22_vm0, %v338_v53  ;;  %v341_v0 = vadd.f32 %v309_v41, %v180_v15 }
  0xbe   :  { %v300_v31 = vpop.xlane.xlu0 %299  ;;  %358 = vst.msk [vmem:[#allocation2 + $0x68] sm:$0xff] %vm22_vm0, %v341_v0  ;;  %v1928_v0 = vmul.f32 0.0012755102, %v674_v7 }
  0xbf   :  { %v340_v22 = vadd.f32 %v300_v31, %v179_v43  ;;  %v370_v43 = vld [vmem:[#allocation3 + $0x48] sm:$0xff] }
  0xc1   :  { %357 = vst.msk [vmem:[#allocation2 + $0x60] sm:$0xff] %vm22_vm0, %v340_v22  ;;  %v327_v50 = vpop.xlane.xlu1 %326 }
  0xc2   :  { %v343_v60 = vadd.f32 %v327_v50, %v182_v20 }
  0xc4   :  { %v318_v29 = vpop.xlane.xlu0 %317  ;;  %360 = vst.msk [vmem:[#allocation2 + $0x78] sm:$0xff] %vm22_vm0, %v343_v60 }
  0xc5   :  { %v342_v23 = vadd.f32 %v318_v29, %v181_v63  ;;  %v506_v56 = vpop.xlane.xlu1 %505  ;;  %v736_v29 = vmul.f32 %v1924_v28, %v1924_v28 }
  0xc6   :  { %v634_v18 = vadd.f32 %v506_v56, %v362_v9  ;;  %v735_v9 = vmul.f32 %v1926_v45, %v1926_v45 }
  0xc7   :  { %359 = vst.msk [vmem:[#allocation2 + $0x70] sm:$0xff] %vm22_vm0, %v342_v23 }
  0xc8   :  { %v497_v4 = vpop.xlane.xlu0 %496  ;;  %650 = vst.msk [vmem:[#allocation3 + $0x8] sm:$0xff] %vm22_vm0, %v634_v18  ;;  %v369_v18 = vld [vmem:[#allocation3 + $0x40] sm:$0xff] }
  0xc9   :  { %v633_v57 = vadd.f32 %v497_v4, %v361_v30  ;;  %v524_v33 = vpop.xlane.xlu1 %523  ;;  %v673_v4 = vld [vmem:[#allocation2 + $0x30] sm:$0xff] }
  0xca   :  { %v636_v5 = vadd.f32 %v524_v33, %v364_v12  ;;  %v738_v33 = vmul.f32 %v1928_v0, %v1928_v0 }
  0xcb   :  { %649 = vst.msk [vmem:[#allocation3] sm:$0xff] %vm22_vm0, %v633_v57 }
  0xcc   :  { %v515_v34 = vpop.xlane.xlu0 %514  ;;  %652 = vst.msk [vmem:[#allocation3 + $0x18] sm:$0xff] %vm22_vm0, %v636_v5 }
  0xcd   :  { %v635_v32 = vadd.f32 %v515_v34, %v363_v58  ;;  %v542_v51 = vpop.xlane.xlu1 %541 }
  0xce   :  { %v638_v13 = vadd.f32 %v542_v51, %v366_v16  ;;  %v1938_v51 = vmul.f32 0.0012755102, %v673_v4 }
  0xcf   :  { %651 = vst.msk [vmem:[#allocation3 + $0x10] sm:$0xff] %vm22_vm0, %v635_v32  ;;  %v700_v17 = vld [vmem:[#allocation3 + $0x8] sm:$0xff] }
  0xd0   :  { %v533_v14 = vpop.xlane.xlu0 %532  ;;  %v716_v54 = vmul.f32 0.0012755102, %v700_v17  ;;  %654 = vst.msk [vmem:[#allocation3 + $0x28] sm:$0xff] %vm22_vm0, %v638_v13  ;;  %v372_v13 = vld [vmem:[#allocation3 + $0x58] sm:$0xff]  ;;  %v737_v6 = vmul.f32 %v1938_v51, %v1938_v51 }
  0xd1   :  { %v637_v25 = vadd.f32 %v533_v14, %v365_v11  ;;  %v560_v38 = vpop.xlane.xlu1 %559 }
  0xd2   :  { %v699_v52 = vld [vmem:[#allocation3] sm:$0xff]  ;;  %v748_v39 = vsub.f32 %v716_v54, %v732_v21  ;;  %v640_v49 = vadd.f32 %v560_v38, %v368_v19  ;;  %v1940_v19 = vmul.f32 0.0012755102, %v676_v47  ;;  %v813_v47 = vld [vmem:[%s2222_s1 + $0x10] sm:$0xff] }
  0xd3   :  { %v715_v46 = vmul.f32 0.0012755102, %v699_v52  ;;  %653 = vst.msk [vmem:[#allocation3 + $0x20] sm:$0xff] %vm22_vm0, %v637_v25  ;;  %v702_v40 = vld [vmem:[#allocation3 + $0x18] sm:$0xff]  ;;  %v675_v21 = vld [vmem:[#allocation2 + $0x40] sm:$0xff] }
  0xd4   :  { %v764_v61 = vmax.f32 %v748_v39, 0.0  ;;  %v718_v10 = vmul.f32 0.0012755102, %v702_v40  ;;  %656 = vst.msk [vmem:[#allocation3 + $0x38] sm:$0xff] %vm22_vm0, %v640_v49  ;;  %v678_v39 = vld [vmem:[#allocation2 + $0x58] sm:$0xff]  ;;  %v371_v49 = vld [vmem:[#allocation3 + $0x50] sm:$0xff] }
  0xd5   :  { %v747_v48 = vsub.f32 %v715_v46, %v731_v35  ;;  %v551_v36 = vpop.xlane.xlu0 %550  ;;  %v1945_v40 = vmul.f32 0.0012755102, %v675_v21  ;;  %v862_v21 = vld [vmem:[%s2223_s2 + $0x18] sm:$0xff] }
  0xd6   :  { %v701_v62 = vld [vmem:[#allocation3 + $0x10] sm:$0xff]  ;;  %v780_v42 = vadd.f32 1e-05, %v764_v61  ;;  %v750_v53 = vsub.f32 %v718_v10, %v734_v55  ;;  %v639_v22 = vadd.f32 %v551_v36, %v367_v59  ;;  %v740_v61 = vmul.f32 %v1940_v19, %v1940_v19 }
  0xd7   :  { %v763_v15 = vmax.f32 %v747_v48, 0.0  ;;  %v717_v41 = vmul.f32 0.0012755102, %v701_v62  ;;  %v704_v31 = vld [vmem:[#allocation3 + $0x28] sm:$0xff]  ;;  %v1953_v62 = vmul.f32 0.0012755102, %v678_v39 }
  0xd8   :  { %932 = vrsqrt.f32 %v780_v42  ;;  %v766_v50 = vmax.f32 %v750_v53, 0.0  ;;  %v578_v60 = vpop.xlane.xlu1 %577  ;;  %v720_v23 = vmul.f32 0.0012755102, %v704_v31  ;;  %655 = vst.msk [vmem:[#allocation3 + $0x30] sm:$0xff] %vm22_vm0, %v639_v22  ;;  %v812_v48 = vld [vmem:[%s2222_s1 + $0x8] sm:$0xff]  ;;  %v811_v53 = vld [vmem:[%s2222_s1] sm:$0xff]  ;;  %v739_v31 = vmul.f32 %v1945_v40, %v1945_v40 }
  0xd9   :  { %v779_v20 = vadd.f32 1e-05, %v763_v15  ;;  %v749_v63 = vsub.f32 %v717_v41, %v733_v3  ;;  %v642_v30 = vadd.f32 %v578_v60, %v370_v43  ;;  %v374_v42 = vld [vmem:[#allocation3 + $0x68] sm:$0xff]  ;;  %v677_v22 = vld [vmem:[#allocation2 + $0x50] sm:$0xff]  ;;  %v742_v4 = vmul.f32 %v1953_v62, %v1953_v62  ;;  %v376_v39 = vld [vmem:[#allocation3 + $0x78] sm:$0xff] }
  0xda   :  { %v703_v56 = vld [vmem:[#allocation3 + $0x20] sm:$0xff]  ;;  %v782_v12 = vadd.f32 1e-05, %v766_v50  ;;  %v752_v58 = vsub.f32 %v720_v23, %v736_v29 }
  0xdb   :  { %934 = vrsqrt.f32 %v779_v20  ;;  %v765_v57 = vmax.f32 %v749_v63, 0.0  ;;  %v719_v8 = vmul.f32 0.0012755102, %v703_v56  ;;  %v706_v5 = vld [vmem:[#allocation3 + $0x38] sm:$0xff]  ;;  %658 = vst.msk [vmem:[#allocation3 + $0x48] sm:$0xff] %vm22_vm0, %v642_v30  ;;  %v860_v20 = vld [vmem:[%s2223_s2 + $0x8] sm:$0xff] }
  0xdc   :  { %936 = vrsqrt.f32 %v782_v12  ;;  %v722_v32 = vmul.f32 0.0012755102, %v706_v5  ;;  %v569_v27 = vpop.xlane.xlu0 %568  ;;  %v768_v11 = vmax.f32 %v752_v58, 0.0  ;;  %v1977_v5 = vmul.f32 0.0012755102, %v677_v22 }
  0xdd   :  { %v781_v34 = vadd.f32 1e-05, %v765_v57  ;;  %v751_v16 = vsub.f32 %v719_v8, %v735_v9  ;;  %v641_v37 = vadd.f32 %v569_v27, %v369_v18  ;;  %v814_v9 = vld [vmem:[%s2222_s1 + $0x18] sm:$0xff]  ;;  %v859_v57 = vld [vmem:[%s2223_s2] sm:$0xff] }
  0xde   :  { %v754_v14 = vsub.f32 %v722_v32, %v738_v33  ;;  %v784_v54 = vadd.f32 1e-05, %v768_v11  ;;  %v373_v33 = vld [vmem:[#allocation3 + $0x60] sm:$0xff] }
  0xdf   :  { %938 = vrsqrt.f32 %v781_v34  ;;  %v767_v17 = vmax.f32 %v751_v16, 0.0  ;;  %657 = vst.msk [vmem:[#allocation3 + $0x40] sm:$0xff] %vm22_vm0, %v641_v37  ;;  %v596_v25 = vpop.xlane.xlu1 %595  ;;  %v705_v35 = vld [vmem:[#allocation3 + $0x30] sm:$0xff] }
  0xe0   :  { %v770_v38 = vmax.f32 %v754_v14, 0.0  ;;  %v644_v2 = vadd.f32 %v596_v25, %v372_v13  ;;  %940 = vrsqrt.f32 %v784_v54  ;;  %v721_v46 = vmul.f32 0.0012755102, %v705_v35 }
  0xe1   :  { %v783_v52 = vadd.f32 1e-05, %v767_v17 }
  0xe2   :  { %v786_v55 = vadd.f32 1e-05, %v770_v38  ;;  %v708_v7 = vld [vmem:[#allocation3 + $0x48] sm:$0xff]  ;;  %660 = vst.msk [vmem:[#allocation3 + $0x58] sm:$0xff] %vm22_vm0, %v644_v2  ;;  %v753_v10 = vsub.f32 %v721_v46, %v737_v6  ;;  %v861_v38 = vld [vmem:[%s2223_s2 + $0x10] sm:$0xff]  ;;  %v741_v46 = vmul.f32 %v1977_v5, %v1977_v5 }
  0xe3   :  { %942 = vrsqrt.f32 %v783_v52  ;;  %v724_v59 = vmul.f32 0.0012755102, %v708_v7  ;;  %v587_v3 = vpop.xlane.xlu0 %586  ;;  %v816_v2 = vld [vmem:[%s2222_s1 + $0x28] sm:$0xff] }
  0xe4   :  { %944 = vrsqrt.f32 %v786_v55  ;;  %v643_v36 = vadd.f32 %v587_v3, %v371_v49  ;;  %v769_v41 = vmax.f32 %v753_v10, 0.0  ;;  %v679_v10 = vld [vmem:[#allocation2 + $0x60] sm:$0xff] }
  0xe5   :  { %v933_v15 = vpop.eup %932  ;;  %v756_v43 = vsub.f32 %v724_v59, %v740_v61 }
  0xe6   :  { %v828_v50 = vmul.f32 %v933_v15, %v812_v48  ;;  %v707_v63 = vld [vmem:[#allocation3 + $0x40] sm:$0xff]  ;;  %659 = vst.msk [vmem:[#allocation3 + $0x50] sm:$0xff] %vm22_vm0, %v643_v36  ;;  %v614_v60 = vpop.xlane.xlu1 %613  ;;  %v785_v23 = vadd.f32 1e-05, %v769_v41  ;;  %v818_v41 = vld [vmem:[%s2222_s1 + $0x38] sm:$0xff] }
  0xe7   :  { %v772_v56 = vmax.f32 %v756_v43, 0.0  ;;  %v723_v30 = vmul.f32 0.0012755102, %v707_v63  ;;  %v646_v18 = vadd.f32 %v614_v60, %v374_v42  ;;  %v375_v60 = vld [vmem:[#allocation3 + $0x70] sm:$0xff] }
  0xe8   :  { %v935_v29 = vpop.eup %934  ;;  %844 = vst.msk [vmem:[%s2224_s3 + $0x8] sm:$0xff] %vm22_vm0, %v828_v50  ;;  %v876_v12 = vmul.f32 %v828_v50, %v1903_v26  ;;  %946 = vrsqrt.f32 %v785_v23  ;;  %v680_v26 = vld [vmem:[#allocation2 + $0x68] sm:$0xff]  ;;  %v2035_v23 = vmul.f32 0.0012755102, %v679_v10 }
  0xe9   :  { %v827_v8 = vmul.f32 %v935_v29, %v811_v53  ;;  %v937_v58 = vpop.eup %936  ;;  %v788_v34 = vadd.f32 1e-05, %v772_v56  ;;  %v755_v16 = vsub.f32 %v723_v30, %v739_v31  ;;  %v710_v32 = vld [vmem:[#allocation3 + $0x58] sm:$0xff]  ;;  %662 = vst.msk [vmem:[#allocation3 + $0x68] sm:$0xff] %vm22_vm0, %v646_v18  ;;  %v605_v17 = vpop.xlane.xlu0 %604  ;;  %v2008_v49 = vmul.f32 0.0012755102, %v680_v26 }
  0xea   :  { %v892_v27 = vsub.f32 %v860_v20, %v876_v12  ;;  %v830_v37 = vmul.f32 %v937_v58, %v814_v9  ;;  %v726_v13 = vmul.f32 0.0012755102, %v710_v32  ;;  %v645_v25 = vadd.f32 %v605_v17, %v373_v33  ;;  %v863_v30 = vld [vmem:[%s2223_s2 + $0x20] sm:$0xff]  ;;  %v866_v58 = vld [vmem:[%s2223_s2 + $0x38] sm:$0xff] }
  0xeb   :  { %843 = vst.msk [vmem:[%s2224_s3] sm:$0xff] %vm22_vm0, %v827_v8  ;;  %v875_v11 = vmul.f32 %v827_v8, %v1906_v24  ;;  %948 = vrsqrt.f32 %v788_v34  ;;  %v771_v54 = vmax.f32 %v755_v16, 0.0  ;;  %v744_v9 = vmul.f32 %v2008_v49, %v2008_v49  ;;  %v682_v8 = vld [vmem:[#allocation2 + $0x78] sm:$0xff] }
  0xec   :  { %v939_v14 = vpop.eup %938  ;;  %908 = vst.msk [vmem:[%s2225_s4 + $0x8] sm:$0xff] %vm22_vm0, %v892_v27  ;;  %846 = vst.msk [vmem:[%s2224_s3 + $0x18] sm:$0xff] %vm22_vm0, %v830_v37  ;;  %v878_v24 = vmul.f32 %v830_v37, %v1909_v44  ;;  %v758_v6 = vsub.f32 %v726_v13, %v742_v4  ;;  %v815_v44 = vld [vmem:[%s2222_s1 + $0x20] sm:$0xff]  ;;  %v632_v61 = vpop.xlane.xlu1 %631  ;;  %v681_v37 = vld [vmem:[#allocation2 + $0x70] sm:$0xff] }
  0xed   :  { %v891_v52 = vsub.f32 %v859_v57, %v875_v11  ;;  %v829_v35 = vmul.f32 %v939_v14, %v813_v47  ;;  %v787_v55 = vadd.f32 1e-05, %v771_v54  ;;  %v709_v7 = vld [vmem:[#allocation3 + $0x50] sm:$0xff]  ;;  %661 = vst.msk [vmem:[#allocation3 + $0x60] sm:$0xff] %vm22_vm0, %v645_v25  ;;  %v941_v48 = vpop.eup %940  ;;  %v648_v43 = vadd.f32 %v632_v61, %v376_v39  ;;  %v820_v54 = vld [vmem:[%s2222_s1 + $0x48] sm:$0xff]  ;;  %v819_v61 = vld [vmem:[%s2222_s1 + $0x40] sm:$0xff] }
  0xee   :  { %v894_v59 = vsub.f32 %v862_v21, %v878_v24  ;;  %v774_v36 = vmax.f32 %v758_v6, 0.0  ;;  %v725_v42 = vmul.f32 0.0012755102, %v709_v7  ;;  %v832_v53 = vmul.f32 %v941_v48, %v816_v2  ;;  %v865_v2 = vld [vmem:[%s2223_s2 + $0x30] sm:$0xff]  ;;  %v868_v7 = vld [vmem:[%s2223_s2 + $0x48] sm:$0xff] }
  0xef   :  { %907 = vst.msk [vmem:[%s2225_s4] sm:$0xff] %vm22_vm0, %v891_v52  ;;  %845 = vst.msk [vmem:[%s2224_s3 + $0x10] sm:$0xff] %vm22_vm0, %v829_v35  ;;  %v877_v3 = vmul.f32 %v829_v35, %v1914_v1  ;;  %950 = vrsqrt.f32 %v787_v55  ;;  %v864_v1 = vld [vmem:[%s2223_s2 + $0x28] sm:$0xff]  ;;  %v743_v11 = vmul.f32 %v2035_v23, %v2035_v23  ;;  %v2073_v14 = vmul.f32 0.0012755102, %v682_v8  ;;  %v869_v8 = vld [vmem:[%s2223_s2 + $0x50] sm:$0xff] }
  0xf0   :  { %v943_v15 = vpop.eup %942  ;;  %910 = vst.msk [vmem:[%s2225_s4 + $0x18] sm:$0xff] %vm22_vm0, %v894_v59  ;;  %v790_v20 = vadd.f32 1e-05, %v774_v36  ;;  %v757_v50 = vsub.f32 %v725_v42, %v741_v46  ;;  %v712_v63 = vld [vmem:[#allocation3 + $0x68] sm:$0xff]  ;;  %848 = vst.msk [vmem:[%s2224_s3 + $0x28] sm:$0xff] %vm22_vm0, %v832_v53  ;;  %v880_v56 = vmul.f32 %v832_v53, %v1924_v28  ;;  %v623_v4 = vpop.xlane.xlu0 %622 }
  0xf1   :  { %v893_v31 = vsub.f32 %v861_v38, %v877_v3  ;;  %v831_v22 = vmul.f32 %v943_v15, %v815_v44  ;;  %v945_v29 = vpop.eup %944  ;;  %v728_v18 = vmul.f32 0.0012755102, %v712_v63  ;;  %664 = vst.msk [vmem:[#allocation3 + $0x78] sm:$0xff] %vm22_vm0, %v648_v43  ;;  %v647_v34 = vadd.f32 %v623_v4, %v375_v60  ;;  %v822_v43 = vld [vmem:[%s2222_s1 + $0x58] sm:$0xff] }
  0xf2   :  { %v834_v12 = vmul.f32 %v945_v29, %v818_v41  ;;  %952 = vrsqrt.f32 %v790_v20  ;;  %v773_v57 = vmax.f32 %v757_v50, 0.0  ;;  %v896_v33 = vsub.f32 %v864_v1, %v880_v56  ;;  %v821_v56 = vld [vmem:[%s2222_s1 + $0x50] sm:$0xff] }
  0xf3   :  { %909 = vst.msk [vmem:[%s2225_s4 + $0x10] sm:$0xff] %vm22_vm0, %v893_v31  ;;  %847 = vst.msk [vmem:[%s2224_s3 + $0x20] sm:$0xff] %vm22_vm0, %v831_v22  ;;  %v879_v28 = vmul.f32 %v831_v22, %v1926_v45  ;;  %v760_v47 = vsub.f32 %v728_v18, %v744_v9  ;;  %v817_v45 = vld [vmem:[%s2222_s1 + $0x30] sm:$0xff]  ;;  %v2082_v35 = vmul.f32 0.0012755102, %v681_v37  ;;  %v746_v55 = vmul.f32 %v2073_v14, %v2073_v14  ;;  %v867_v31 = vld [vmem:[%s2223_s2 + $0x40] sm:$0xff] }
  0xf4   :  { %850 = vst.msk [vmem:[%s2224_s3 + $0x38] sm:$0xff] %vm22_vm0, %v834_v12  ;;  %v882_v32 = vmul.f32 %v834_v12, %v1928_v0  ;;  %v789_v26 = vadd.f32 1e-05, %v773_v57  ;;  %v711_v27 = vld [vmem:[#allocation3 + $0x60] sm:$0xff]  ;;  %912 = vst.msk [vmem:[%s2225_s4 + $0x28] sm:$0xff] %vm22_vm0, %v896_v33  ;;  %v870_v9 = vld [vmem:[%s2223_s2 + $0x58] sm:$0xff] }
  0xf5   :  { %v895_v16 = vsub.f32 %v863_v30, %v879_v28  ;;  %v776_v13 = vmax.f32 %v760_v47, 0.0  ;;  %v727_v17 = vmul.f32 0.0012755102, %v711_v27  ;;  %663 = vst.msk [vmem:[#allocation3 + $0x70] sm:$0xff] %vm22_vm0, %v647_v34  ;;  %v947_v0 = vpop.eup %946  ;;  %v745_v36 = vmul.f32 %v2082_v35, %v2082_v35  ;;  %v824_v57 = vld [vmem:[%s2222_s1 + $0x68] sm:$0xff]  ;;  %v871_v27 = vld [vmem:[%s2223_s2 + $0x60] sm:$0xff] }
  0xf6   :  { %v898_v21 = vsub.f32 %v866_v58, %v882_v32  ;;  %954 = vrsqrt.f32 %v789_v26  ;;  %v833_v25 = vmul.f32 %v947_v0, %v817_v45  ;;  %v872_v34 = vld [vmem:[%s2223_s2 + $0x68] sm:$0xff]  ;;  %v825_v0 = vld [vmem:[%s2222_s1 + $0x70] sm:$0xff] }
  0xf7   :  { %911 = vst.msk [vmem:[%s2225_s4 + $0x20] sm:$0xff] %vm22_vm0, %v895_v16  ;;  %v792_v52 = vadd.f32 1e-05, %v776_v13  ;;  %v759_v24 = vsub.f32 %v727_v17, %v743_v11  ;;  %v823_v16 = vld [vmem:[%s2222_s1 + $0x60] sm:$0xff]  ;;  %v826_v11 = vld [vmem:[%s2222_s1 + $0x78] sm:$0xff] }
  0xf8   :  { %v949_v38 = vpop.eup %948  ;;  %914 = vst.msk [vmem:[%s2225_s4 + $0x38] sm:$0xff] %vm22_vm0, %v898_v21  ;;  %v714_v6 = vld [vmem:[#allocation3 + $0x78] sm:$0xff]  ;;  %849 = vst.msk [vmem:[%s2224_s3 + $0x30] sm:$0xff] %vm22_vm0, %v833_v25  ;;  %v881_v39 = vmul.f32 %v833_v25, %v1938_v51 }
  0xf9   :  { %v836_v46 = vmul.f32 %v949_v38, %v820_v54  ;;  %956 = vrsqrt.f32 %v792_v52  ;;  %v775_v44 = vmax.f32 %v759_v24, 0.0  ;;  %v730_v48 = vmul.f32 0.0012755102, %v714_v6  ;;  %v873_v24 = vld [vmem:[%s2223_s2 + $0x70] sm:$0xff] }
  0xfa   :  { %v897_v10 = vsub.f32 %v865_v2, %v881_v39 }
  0xfb   :  { %852 = vst.msk [vmem:[%s2224_s3 + $0x48] sm:$0xff] %vm22_vm0, %v836_v46  ;;  %v884_v51 = vmul.f32 %v836_v46, %v1940_v19  ;;  %v791_v59 = vadd.f32 1e-05, %v775_v44  ;;  %v762_v42 = vsub.f32 %v730_v48, %v746_v55 }
  0xfc   :  { %v951_v3 = vpop.eup %950  ;;  %v713_v15 = vld [vmem:[#allocation3 + $0x70] sm:$0xff]  ;;  %913 = vst.msk [vmem:[%s2225_s4 + $0x30] sm:$0xff] %vm22_vm0, %v897_v10 }
  0xfd   :  { %v900_v53 = vsub.f32 %v868_v7, %v884_v51  ;;  %v835_v41 = vmul.f32 %v951_v3, %v819_v61  ;;  %958 = vrsqrt.f32 %v791_v59  ;;  %v729_v19 = vmul.f32 0.0012755102, %v713_v15 }
  0xfe   :  { %v778_v1 = vmax.f32 %v762_v42, 0.0 }
  0xff   :  { %v953_v22 = vpop.eup %952  ;;  %916 = vst.msk [vmem:[%s2225_s4 + $0x48] sm:$0xff] %vm22_vm0, %v900_v53  ;;  %851 = vst.msk [vmem:[%s2224_s3 + $0x40] sm:$0xff] %vm22_vm0, %v835_v41  ;;  %v883_v20 = vmul.f32 %v835_v41, %v1945_v40  ;;  %v761_v50 = vsub.f32 %v729_v19, %v745_v36 }
 0x100   :  { %v838_v63 = vmul.f32 %v953_v22, %v822_v43  ;;  %v794_v60 = vadd.f32 1e-05, %v778_v1 }
 0x101   :  { %v899_v29 = vsub.f32 %v867_v31, %v883_v20  ;;  %v777_v30 = vmax.f32 %v761_v50, 0.0 }
 0x102   :  { %854 = vst.msk [vmem:[%s2224_s3 + $0x58] sm:$0xff] %vm22_vm0, %v838_v63  ;;  %v886_v40 = vmul.f32 %v838_v63, %v1953_v62  ;;  %960 = vrsqrt.f32 %v794_v60 }
 0x103   :  { %v955_v18 = vpop.eup %954  ;;  %915 = vst.msk [vmem:[%s2225_s4 + $0x40] sm:$0xff] %vm22_vm0, %v899_v29  ;;  %v793_v4 = vadd.f32 1e-05, %v777_v30 }
 0x104   :  { %v902_v28 = vsub.f32 %v870_v9, %v886_v40  ;;  %v837_v12 = vmul.f32 %v955_v18, %v821_v56 }
 0x105   :  { %962 = vrsqrt.f32 %v793_v4 }
 0x106   :  { %v957_v62 = vpop.eup %956  ;;  %918 = vst.msk [vmem:[%s2225_s4 + $0x58] sm:$0xff] %vm22_vm0, %v902_v28  ;;  %853 = vst.msk [vmem:[%s2224_s3 + $0x50] sm:$0xff] %vm22_vm0, %v837_v12  ;;  %v885_v33 = vmul.f32 %v837_v12, %v1977_v5 }
 0x107   :  { %v840_v58 = vmul.f32 %v957_v62, %v824_v57 }
 0x108   :  { %v901_v47 = vsub.f32 %v869_v8, %v885_v33 }
 0x109   :  { %856 = vst.msk [vmem:[%s2224_s3 + $0x68] sm:$0xff] %vm22_vm0, %v840_v58  ;;  %v888_v32 = vmul.f32 %v840_v58, %v2008_v49 }
 0x10a   :  { %v959_v45 = vpop.eup %958  ;;  %917 = vst.msk [vmem:[%s2225_s4 + $0x50] sm:$0xff] %vm22_vm0, %v901_v47 }
 0x10b   :  { %v904_v5 = vsub.f32 %v872_v34, %v888_v32  ;;  %v839_v26 = vmul.f32 %v959_v45, %v823_v16 }
 0x10d   :  { %920 = vst.msk [vmem:[%s2225_s4 + $0x68] sm:$0xff] %vm22_vm0, %v904_v5  ;;  %855 = vst.msk [vmem:[%s2224_s3 + $0x60] sm:$0xff] %vm22_vm0, %v839_v26  ;;  %v887_v49 = vmul.f32 %v839_v26, %v2035_v23  ;;  %v874_v23 = vld [vmem:[%s2223_s2 + $0x78] sm:$0xff] }
 0x10f   :  { %v961_v37 = vpop.eup %960  ;;  %v903_v13 = vsub.f32 %v871_v27, %v887_v49 }
 0x110   :  { %v842_v17 = vmul.f32 %v961_v37, %v826_v11 }
 0x111   :  { %919 = vst.msk [vmem:[%s2225_s4 + $0x60] sm:$0xff] %vm22_vm0, %v903_v13 }
 0x112   :  { %v963_v21 = vpop.eup %962  ;;  %858 = vst.msk [vmem:[%s2224_s3 + $0x78] sm:$0xff] %vm22_vm0, %v842_v17  ;;  %v890_v54 = vmul.f32 %v842_v17, %v2073_v14 }
 0x113   :  { %v841_v25 = vmul.f32 %v963_v21, %v825_v0 }
 0x114   :  { %v906_v52 = vsub.f32 %v874_v23, %v890_v54 }
 0x115   :  { %857 = vst.msk [vmem:[%s2224_s3 + $0x70] sm:$0xff] %vm22_vm0, %v841_v25  ;;  %v889_v38 = vmul.f32 %v841_v25, %v2082_v35 }
 0x116   :  { %922 = vst.msk [vmem:[%s2225_s4 + $0x78] sm:$0xff] %vm22_vm0, %v906_v52 }
 0x117   :  { %v905_v2 = vsub.f32 %v873_v24, %v889_v38 }
 0x119   :  { %921 = vst.msk [vmem:[%s2225_s4 + $0x70] sm:$0xff] %vm22_vm0, %v905_v2 }

// kernel: batchnorm2d.3
= control target key start
LH: loop header
LB: loop body
LE: loop exit
PB: predicated region body
PF: predicated region fallthrough
CT: control target
= control target key end

     0   :  { %v662_v0 = vmov 0   ;;  %vm548_vm0 = vcmask 130048   ;;  %s1863_s1 = inlined_call_operand.vmem [shape: f32[128,1], index: 1, kind: input, shape index: {}]   ;;  %s1864_s2 = inlined_call_operand.vmem [shape: f32[128,1], index: 2, kind: input, shape index: {}]   ;;  %s1865_s0 = inlined_call_operand.vmem [shape: f32[1,128,784], index: 0, kind: input, shape index: {}]   ;;  %s1866_s3 = inlined_call_operand.vmem [shape: f32[1,128,784], index: 3, kind: output, shape index: {}]  }
   0x1   :  { %661 = vset.pattern.permute.xlu1 %v662_v0  ;;  %660 = vset.pattern.permute.xlu0 %v662_v0  ;;  %v128_v1 = vld [vmem:[%s1863_s1 + $0x10] sm:$0xff]  ;;  %v126_v2 = vld [vmem:[%s1863_s1] sm:$0xff]  ;;  %v129_v3 = vld [vmem:[%s1863_s1 + $0x18] sm:$0xff] }
   0x2   :  { %154 = vperm.xlu1 %661, %v128_v1   ;;  %144 = vperm.xlu0 %660, %v126_v2   ;;  %v127_v4 = vld [vmem:[%s1863_s1 + $0x8] sm:$0xff]  ;;  %v130_v6 = vld [vmem:[%s1863_s1 + $0x20] sm:$0xff]  ;;  %v133_v7 = vld [vmem:[%s1863_s1 + $0x38] sm:$0xff] }
   0x3   :  { %v131_v5 = vld [vmem:[%s1863_s1 + $0x28] sm:$0xff]  ;;  %v132_v8 = vld [vmem:[%s1863_s1 + $0x30] sm:$0xff]  ;;  %v134_v10 = vld [vmem:[%s1863_s1 + $0x40] sm:$0xff] }
   0x4   :  { %v135_v9 = vld [vmem:[%s1863_s1 + $0x48] sm:$0xff]  ;;  %v137_v11 = vld [vmem:[%s1863_s1 + $0x58] sm:$0xff]  ;;  %v136_v12 = vld [vmem:[%s1863_s1 + $0x50] sm:$0xff] }
   0x5   :  { %v139_v13 = vld [vmem:[%s1863_s1 + $0x68] sm:$0xff]  ;;  %v138_v14 = vld [vmem:[%s1863_s1 + $0x60] sm:$0xff]  ;;  %v141_v15 = vld [vmem:[%s1863_s1 + $0x78] sm:$0xff] }
   0x6   :  { %159 = vperm.xlu1 %661, %v129_v3   ;;  %149 = vperm.xlu0 %660, %v127_v4   ;;  %v140_v16 = vld [vmem:[%s1863_s1 + $0x70] sm:$0xff]  ;;  %v335_v17 = vld [vmem:[%s1864_s2 + $0x8] sm:$0xff]  ;;  %v334_v18 = vld [vmem:[%s1864_s2] sm:$0xff] }
   0x7   :  { %v337_v19 = vld [vmem:[%s1864_s2 + $0x18] sm:$0xff]  ;;  %v336_v20 = vld [vmem:[%s1864_s2 + $0x10] sm:$0xff]  ;;  %v339_v21 = vld [vmem:[%s1864_s2 + $0x28] sm:$0xff] }
   0x8   :  { %v338_v22 = vld [vmem:[%s1864_s2 + $0x20] sm:$0xff]  ;;  %v341_v23 = vld [vmem:[%s1864_s2 + $0x38] sm:$0xff]  ;;  %v340_v24 = vld [vmem:[%s1864_s2 + $0x30] sm:$0xff] }
   0x9   :  { %v343_v25 = vld [vmem:[%s1864_s2 + $0x48] sm:$0xff]  ;;  %v342_v26 = vld [vmem:[%s1864_s2 + $0x40] sm:$0xff]  ;;  %v345_v27 = vld [vmem:[%s1864_s2 + $0x58] sm:$0xff] }
   0xa   :  { %169 = vperm.xlu1 %661, %v131_v5   ;;  %164 = vperm.xlu0 %660, %v130_v6   ;;  %v344_v28 = vld [vmem:[%s1864_s2 + $0x50] sm:$0xff]  ;;  %v347_v29 = vld [vmem:[%s1864_s2 + $0x68] sm:$0xff]  ;;  %v346_v30 = vld [vmem:[%s1864_s2 + $0x60] sm:$0xff] }
   0xb   :  { %v349_v31 = vld [vmem:[%s1864_s2 + $0x78] sm:$0xff]  ;;  %v348_v32 = vld [vmem:[%s1864_s2 + $0x70] sm:$0xff]  ;;  %v30_v37 = vld [vmem:[%s1865_s0 + $0x80] sm:$0xff] }
   0xc   :  { %v28_v35 = vld [vmem:[%s1865_s0 + $0x70] sm:$0xff]  ;;  %v29_v36 = vld [vmem:[%s1865_s0 + $0x78] sm:$0xff]  ;;  %v31_v38 = vld [vmem:[%s1865_s0 + $0x88] sm:$0xff] }
   0xd   :  { %v32_v39 = vld [vmem:[%s1865_s0 + $0x90] sm:$0xff]  ;;  %v33_v40 = vld [vmem:[%s1865_s0 + $0x98] sm:$0xff]  ;;  %v34_v43 = vld [vmem:[%s1865_s0 + $0xa0] sm:$0xff] }
   0xe   :  { %179 = vperm.xlu1 %661, %v133_v7   ;;  %174 = vperm.xlu0 %660, %v132_v8   ;;  %v14_v44 = vld [vmem:[%s1865_s0] sm:$0xff]  ;;  %v15_v45 = vld [vmem:[%s1865_s0 + $0x8] sm:$0xff]  ;;  %v16_v46 = vld [vmem:[%s1865_s0 + $0x10] sm:$0xff] }
   0xf   :  { %v17_v47 = vld [vmem:[%s1865_s0 + $0x18] sm:$0xff]  ;;  %v18_v48 = vld [vmem:[%s1865_s0 + $0x20] sm:$0xff]  ;;  %v19_v49 = vld [vmem:[%s1865_s0 + $0x28] sm:$0xff] }
  0x10   :  { %v20_v50 = vld [vmem:[%s1865_s0 + $0x30] sm:$0xff]  ;;  %v35_v51 = vld [vmem:[%s1865_s0 + $0xa8] sm:$0xff]  ;;  %v37_v53 = vld [vmem:[%s1865_s0 + $0xb8] sm:$0xff] }
  0x11   :  { %v36_v52 = vld [vmem:[%s1865_s0 + $0xb0] sm:$0xff]  ;;  %v38_v54 = vld [vmem:[%s1865_s0 + $0xc0] sm:$0xff]  ;;  %v39_v57 = vld [vmem:[%s1865_s0 + $0xc8] sm:$0xff] }
  0x12   :  { %189 = vperm.xlu1 %661, %v135_v9   ;;  %184 = vperm.xlu0 %660, %v134_v10   ;;  %v40_v58 = vld [vmem:[%s1865_s0 + $0xd0] sm:$0xff]  ;;  %v41_v59 = vld [vmem:[%s1865_s0 + $0xd8] sm:$0xff]  ;;  %v22_v3 = vld [vmem:[%s1865_s0 + $0x40] sm:$0xff] }
  0x13   :  { %v21_v60 = vld [vmem:[%s1865_s0 + $0x38] sm:$0xff]  ;;  %v23_v4 = vld [vmem:[%s1865_s0 + $0x48] sm:$0xff]  ;;  %v24_v5 = vld [vmem:[%s1865_s0 + $0x50] sm:$0xff] }
  0x14   :  { %v25_v6 = vld [vmem:[%s1865_s0 + $0x58] sm:$0xff] }
  0x16   :  { %199 = vperm.xlu1 %661, %v137_v11   ;;  %194 = vperm.xlu0 %660, %v136_v12   ;;  %v26_v11 = vld [vmem:[%s1865_s0 + $0x60] sm:$0xff]  ;;  %v27_v12 = vld [vmem:[%s1865_s0 + $0x68] sm:$0xff] }
  0x1a   :  { %209 = vperm.xlu1 %661, %v139_v13   ;;  %204 = vperm.xlu0 %660, %v138_v14   ;;  %v49_v13 = vld [vmem:[%s1865_s0 + $0x118] sm:$0xff]  ;;  %v50_v14 = vld [vmem:[%s1865_s0 + $0x120] sm:$0xff] }
  0x1e   :  { %219 = vperm.xlu1 %661, %v141_v15   ;;  %214 = vperm.xlu0 %660, %v140_v16  }
  0x22   :  { %357 = vperm.xlu1 %661, %v335_v17   ;;  %352 = vperm.xlu0 %660, %v334_v18  }
  0x26   :  { %367 = vperm.xlu1 %661, %v337_v19   ;;  %362 = vperm.xlu0 %660, %v336_v20   ;;  %v51_v19 = vld [vmem:[%s1865_s0 + $0x128] sm:$0xff]  ;;  %v52_v20 = vld [vmem:[%s1865_s0 + $0x130] sm:$0xff] }
  0x2a   :  { %377 = vperm.xlu1 %661, %v339_v21   ;;  %372 = vperm.xlu0 %660, %v338_v22   ;;  %v53_v21 = vld [vmem:[%s1865_s0 + $0x138] sm:$0xff]  ;;  %v54_v22 = vld [vmem:[%s1865_s0 + $0x140] sm:$0xff] }
  0x2e   :  { %387 = vperm.xlu1 %661, %v341_v23   ;;  %382 = vperm.xlu0 %660, %v340_v24  }
  0x32   :  { %397 = vperm.xlu1 %661, %v343_v25   ;;  %392 = vperm.xlu0 %660, %v342_v26  }
  0x36   :  { %407 = vperm.xlu1 %661, %v345_v27   ;;  %402 = vperm.xlu0 %660, %v344_v28   ;;  %v55_v27 = vld [vmem:[%s1865_s0 + $0x148] sm:$0xff]  ;;  %v42_v28 = vld [vmem:[%s1865_s0 + $0xe0] sm:$0xff] }
  0x3a   :  { %417 = vperm.xlu1 %661, %v347_v29   ;;  %412 = vperm.xlu0 %660, %v346_v30   ;;  %v43_v29 = vld [vmem:[%s1865_s0 + $0xe8] sm:$0xff]  ;;  %v44_v30 = vld [vmem:[%s1865_s0 + $0xf0] sm:$0xff] }
  0x3e   :  { %427 = vperm.xlu1 %661, %v349_v31   ;;  %422 = vperm.xlu0 %660, %v348_v32  }
  0x7d   :  { %v155_v33 = vpop.permute.xlu1 %154  ;;  %v145_v34 = vpop.permute.xlu0 %144 }
  0x7e   :  { %v835_v55 = vmul.f32 %v155_v33, %v28_v35  ;;  %v837_v56 = vmul.f32 %v155_v33, %v29_v36  ;;  %v855_v63 = vmul.f32 %v155_v33, %v30_v37  ;;  %v857_v0 = vmul.f32 %v155_v33, %v31_v38  ;;  %v45_v37 = vld [vmem:[%s1865_s0 + $0xf8] sm:$0xff]  ;;  %v46_v38 = vld [vmem:[%s1865_s0 + $0x100] sm:$0xff] }
  0x7f   :  { %v859_v1 = vmul.f32 %v155_v33, %v32_v39  ;;  %v861_v2 = vmul.f32 %v155_v33, %v33_v40  ;;  %v875_v7 = vmul.f32 %v155_v33, %v34_v43  ;;  %v877_v8 = vmul.f32 %v145_v34, %v14_v44  ;;  %v47_v39 = vld [vmem:[%s1865_s0 + $0x108] sm:$0xff]  ;;  %v48_v40 = vld [vmem:[%s1865_s0 + $0x110] sm:$0xff] }
  0x80   :  { %v879_v9 = vmul.f32 %v145_v34, %v15_v45  ;;  %v881_v10 = vmul.f32 %v145_v34, %v16_v46  ;;  %v895_v15 = vmul.f32 %v145_v34, %v17_v47  ;;  %v897_v16 = vmul.f32 %v145_v34, %v18_v48  ;;  %v63_v46 = vld [vmem:[%s1865_s0 + $0x188] sm:$0xff]  ;;  %v64_v47 = vld [vmem:[%s1865_s0 + $0x190] sm:$0xff]  ;;  %v65_v48 = vld [vmem:[%s1865_s0 + $0x198] sm:$0xff] }
  0x81   :  { %v160_v41 = vpop.permute.xlu1 %159  ;;  %v797_v42 = vpop.permute.xlu0 %149  ;;  %v899_v17 = vmul.f32 %v145_v34, %v19_v49  ;;  %v901_v18 = vmul.f32 %v145_v34, %v20_v50  ;;  %v66_v49 = vld [vmem:[%s1865_s0 + $0x1a0] sm:$0xff] }
  0x82   :  { %v915_v23 = vmul.f32 %v160_v41, %v35_v51  ;;  %v917_v24 = vmul.f32 %v160_v41, %v36_v52  ;;  %v919_v25 = vmul.f32 %v160_v41, %v37_v53  ;;  %v921_v26 = vmul.f32 %v160_v41, %v38_v54  ;;  %v67_v54 = vld [vmem:[%s1865_s0 + $0x1a8] sm:$0xff] }
  0x83   :  { %v937_v33 = vmul.f32 %v160_v41, %v39_v57  ;;  %v939_v34 = vmul.f32 %v160_v41, %v40_v58  ;;  %v941_v35 = vmul.f32 %v160_v41, %v41_v59  ;;  %v944_v36 = vmul.f32 %v797_v42, %v21_v60  ;;  %v68_v57 = vld [vmem:[%s1865_s0 + $0x1b0] sm:$0xff]  ;;  %v69_v58 = vld [vmem:[%s1865_s0 + $0x1b8] sm:$0xff] }
  0x84   :  { %v959_v41 = vmul.f32 %v797_v42, %v22_v3  ;;  %v962_v43 = vmul.f32 %v797_v42, %v23_v4  ;;  %v965_v44 = vmul.f32 %v797_v42, %v24_v5  ;;  %v968_v45 = vmul.f32 %v797_v42, %v25_v6  ;;  %v57_v5 = vld [vmem:[%s1865_s0 + $0x158] sm:$0xff]  ;;  %v58_v6 = vld [vmem:[%s1865_s0 + $0x160] sm:$0xff] }
  0x85   :  { %v851_v61 = vpop.permute.xlu1 %169  ;;  %v853_v62 = vpop.permute.xlu0 %164  ;;  %v983_v50 = vmul.f32 %v797_v42, %v26_v11  ;;  %v986_v51 = vmul.f32 %v797_v42, %v27_v12  ;;  %v56_v42 = vld [vmem:[%s1865_s0 + $0x150] sm:$0xff]  ;;  %v59_v11 = vld [vmem:[%s1865_s0 + $0x168] sm:$0xff] }
  0x86   :  { %v989_v52 = vmul.f32 %v851_v61, %v49_v13  ;;  %v992_v53 = vmul.f32 %v851_v61, %v50_v14  ;;  %v1007_v59 = vmul.f32 %v851_v61, %v51_v19  ;;  %v1010_v60 = vmul.f32 %v851_v61, %v52_v20  ;;  %v60_v12 = vld [vmem:[%s1865_s0 + $0x170] sm:$0xff] }
  0x87   :  { %v1013_v3 = vmul.f32 %v851_v61, %v53_v21  ;;  %v1016_v4 = vmul.f32 %v851_v61, %v54_v22  ;;  %v1033_v19 = vmul.f32 %v851_v61, %v55_v27  ;;  %v1036_v20 = vmul.f32 %v853_v62, %v42_v28  ;;  %v77_v61 = vld [vmem:[%s1865_s0 + $0x1f8] sm:$0xff]  ;;  %v78_v27 = vld [vmem:[%s1865_s0 + $0x200] sm:$0xff] }
  0x88   :  { %v1039_v21 = vmul.f32 %v853_v62, %v43_v29  ;;  %v1042_v22 = vmul.f32 %v853_v62, %v44_v30  ;;  %v1057_v28 = vmul.f32 %v853_v62, %v45_v37  ;;  %v1060_v29 = vmul.f32 %v853_v62, %v46_v38  ;;  %v81_v37 = vld [vmem:[%s1865_s0 + $0x218] sm:$0xff]  ;;  %v82_v38 = vld [vmem:[%s1865_s0 + $0x220] sm:$0xff] }
  0x89   :  { %v180_v31 = vpop.permute.xlu1 %179  ;;  %v935_v32 = vpop.permute.xlu0 %174  ;;  %1867 = vst [vmem:[#allocation2_spill] sm:$0xff] %v1013_v3  ;;  %1868 = vst [vmem:[#allocation3_spill] sm:$0xff] %v1016_v4  ;;  %v61_v4 = vld [vmem:[%s1865_s0 + $0x178] sm:$0xff]  ;;  %v62_v3 = vld [vmem:[%s1865_s0 + $0x180] sm:$0xff]  ;;  %v1063_v30 = vmul.f32 %v853_v62, %v47_v39 }
  0x8a   :  { %1869 = vst [vmem:[#allocation4_spill] sm:$0xff] %v1036_v20  ;;  %1870 = vst [vmem:[#allocation5_spill] sm:$0xff] %v1039_v21  ;;  %v79_v21 = vld [vmem:[%s1865_s0 + $0x208] sm:$0xff]  ;;  %v80_v20 = vld [vmem:[%s1865_s0 + $0x210] sm:$0xff]  ;;  %v1080_v39 = vmul.f32 %v180_v31, %v63_v46 }
  0x8b   :  { %1871 = vst [vmem:[#allocation6_spill] sm:$0xff] %v1042_v22  ;;  %1872 = vst [vmem:[#allocation7_spill] sm:$0xff] %v1057_v28  ;;  %v1066_v22 = vmul.f32 %v853_v62, %v48_v40  ;;  %v1082_v62 = vmul.f32 %v180_v31, %v64_v47  ;;  %v1084_v40 = vmul.f32 %v180_v31, %v65_v48  ;;  %v71_v28 = vld [vmem:[%s1865_s0 + $0x1c8] sm:$0xff]  ;;  %v72_v46 = vld [vmem:[%s1865_s0 + $0x1d0] sm:$0xff] }
  0x8c   :  { %1873 = vst [vmem:[#allocation8_spill] sm:$0xff] %v1060_v29  ;;  %1874 = vst [vmem:[#allocation9_spill] sm:$0xff] %v1063_v30  ;;  %v83_v30 = vld [vmem:[%s1865_s0 + $0x228] sm:$0xff]  ;;  %v70_v29 = vld [vmem:[%s1865_s0 + $0x1c0] sm:$0xff]  ;;  %v1100_v47 = vmul.f32 %v180_v31, %v67_v54  ;;  %v1102_v48 = vmul.f32 %v180_v31, %v68_v57 }
  0x8d   :  { %v190_v13 = vpop.permute.xlu1 %189  ;;  %v1030_v14 = vpop.permute.xlu0 %184  ;;  %1875 = vst [vmem:[#allocation10_spill] sm:$0xff] %v1066_v22  ;;  %1876 = vst [vmem:[#allocation11_spill] sm:$0xff] %v1080_v39  ;;  %v1086_v22 = vmul.f32 %v180_v31, %v66_v49  ;;  %v1104_v49 = vmul.f32 %v180_v31, %v69_v58  ;;  %v75_v54 = vld [vmem:[%s1865_s0 + $0x1e8] sm:$0xff]  ;;  %v76_v31 = vld [vmem:[%s1865_s0 + $0x1f0] sm:$0xff] }
  0x8e   :  { %1877 = vst [vmem:[#allocation12_spill] sm:$0xff] %v1082_v62  ;;  %1878 = vst [vmem:[#allocation13_spill] sm:$0xff] %v1084_v40  ;;  %v73_v40 = vld [vmem:[%s1865_s0 + $0x1d8] sm:$0xff]  ;;  %v74_v62 = vld [vmem:[%s1865_s0 + $0x1e0] sm:$0xff] }
  0x8f   :  { %1879 = vst [vmem:[#allocation14_spill] sm:$0xff] %v1086_v22  ;;  %1880 = vst [vmem:[#allocation15_spill] sm:$0xff] %v1100_v47  ;;  %v1107_v22 = vmul.f32 %v935_v32, %v56_v42  ;;  %v1124_v42 = vmul.f32 %v935_v32, %v57_v5  ;;  %v91_v47 = vld [vmem:[%s1865_s0 + $0x268] sm:$0xff]  ;;  %v92_v39 = vld [vmem:[%s1865_s0 + $0x270] sm:$0xff] }
  0x90   :  { %1881 = vst [vmem:[#allocation16_spill] sm:$0xff] %v1102_v48  ;;  %1882 = vst [vmem:[#allocation17_spill] sm:$0xff] %v1104_v49  ;;  %v1130_v49 = vmul.f32 %v935_v32, %v59_v11  ;;  %v1133_v48 = vmul.f32 %v935_v32, %v60_v12  ;;  %v93_v5 = vld [vmem:[%s1865_s0 + $0x278] sm:$0xff]  ;;  %v1148_v11 = vmul.f32 %v935_v32, %v61_v4 }
  0x91   :  { %1883 = vst [vmem:[#allocation18_spill] sm:$0xff] %v1107_v22  ;;  %v200_v57 = vpop.permute.xlu1 %199  ;;  %v1121_v58 = vpop.permute.xlu0 %194  ;;  %1884 = vst [vmem:[#allocation19_spill] sm:$0xff] %v1124_v42  ;;  %v1127_v22 = vmul.f32 %v935_v32, %v58_v6  ;;  %v94_v6 = vld [vmem:[%s1865_s0 + $0x280] sm:$0xff]  ;;  %v1151_v12 = vmul.f32 %v935_v32, %v62_v3  ;;  %v96_v42 = vld [vmem:[%s1865_s0 + $0x290] sm:$0xff]  ;;  %v1168_v32 = vmul.f32 %v190_v13, %v80_v20 }
  0x92   :  { %1886 = vst [vmem:[#allocation21_spill] sm:$0xff] %v1130_v49  ;;  %1887 = vst [vmem:[#allocation22_spill] sm:$0xff] %v1133_v48  ;;  %v1153_v48 = vmul.f32 %v190_v13, %v77_v61  ;;  %v1155_v49 = vmul.f32 %v190_v13, %v78_v27  ;;  %v97_v4 = vld [vmem:[%s1865_s0 + $0x298] sm:$0xff]  ;;  %v1170_v3 = vmul.f32 %v190_v13, %v81_v37  ;;  %v84_v27 = vld [vmem:[%s1865_s0 + $0x230] sm:$0xff] }
  0x93   :  { %1885 = vst [vmem:[#allocation20_spill] sm:$0xff] %v1127_v22  ;;  %1888 = vst [vmem:[#allocation23_spill] sm:$0xff] %v1148_v11  ;;  %v95_v22 = vld [vmem:[%s1865_s0 + $0x288] sm:$0xff]  ;;  %v1166_v11 = vmul.f32 %v190_v13, %v79_v21  ;;  %v1172_v61 = vmul.f32 %v190_v13, %v82_v38  ;;  %v1183_v21 = vmul.f32 %v190_v13, %v83_v30  ;;  %v89_v13 = vld [vmem:[%s1865_s0 + $0x258] sm:$0xff] }
  0x94   :  { %1889 = vst [vmem:[#allocation24_spill] sm:$0xff] %v1153_v48  ;;  %1890 = vst [vmem:[#allocation25_spill] sm:$0xff] %v1155_v49  ;;  %v85_v49 = vld [vmem:[%s1865_s0 + $0x238] sm:$0xff]  ;;  %v86_v48 = vld [vmem:[%s1865_s0 + $0x240] sm:$0xff]  ;;  %v1186_v20 = vmul.f32 %v1030_v14, %v70_v29  ;;  %v1189_v37 = vmul.f32 %v1030_v14, %v71_v28  ;;  %v1192_v38 = vmul.f32 %v1030_v14, %v72_v46 }
  0x95   :  { %1891 = vst [vmem:[#allocation26_spill] sm:$0xff] %v1170_v3  ;;  %1892 = vst [vmem:[#allocation27_spill] sm:$0xff] %v1172_v61  ;;  %v87_v61 = vld [vmem:[%s1865_s0 + $0x248] sm:$0xff]  ;;  %v88_v3 = vld [vmem:[%s1865_s0 + $0x250] sm:$0xff]  ;;  %v210_v29 = vpop.permute.xlu1 %209  ;;  %v205_v30 = vpop.permute.xlu0 %204  ;;  %v1204_v28 = vmul.f32 %v1030_v14, %v73_v40  ;;  %v1207_v46 = vmul.f32 %v1030_v14, %v74_v62  ;;  %v1224_v62 = vmul.f32 %v200_v57, %v91_v47 }
  0x96   :  { %1893 = vst [vmem:[#allocation28_spill] sm:$0xff] %v1183_v21  ;;  %1894 = vst [vmem:[#allocation29_spill] sm:$0xff] %v1186_v20  ;;  %v90_v20 = vld [vmem:[%s1865_s0 + $0x260] sm:$0xff]  ;;  %v105_v21 = vld [vmem:[%s1865_s0 + $0x2d8] sm:$0xff]  ;;  %v1241_v47 = vmul.f32 %v200_v57, %v95_v22 }
  0x97   :  { %1895 = vst [vmem:[#allocation30_spill] sm:$0xff] %v1189_v37  ;;  %1896 = vst [vmem:[#allocation31_spill] sm:$0xff] %v1192_v38  ;;  %v1210_v38 = vmul.f32 %v1030_v14, %v75_v54  ;;  %v1213_v37 = vmul.f32 %v1030_v14, %v76_v31  ;;  %v106_v40 = vld [vmem:[%s1865_s0 + $0x2e0] sm:$0xff]  ;;  %v1226_v54 = vmul.f32 %v200_v57, %v92_v39  ;;  %v107_v31 = vld [vmem:[%s1865_s0 + $0x2e8] sm:$0xff] }
  0x98   :  { %1897 = vst [vmem:[#allocation32_spill] sm:$0xff] %v1207_v46  ;;  %v1230_v14 = vmul.f32 %v200_v57, %v94_v6  ;;  %v109_v46 = vld [vmem:[%s1865_s0 + $0x2f8] sm:$0xff]  ;;  %1903 = vst [vmem:[#allocation38_spill] sm:$0xff] %v1241_v47  ;;  %v1243_v39 = vmul.f32 %v200_v57, %v96_v42  ;;  %v1248_v6 = vmul.f32 %v1121_v58, %v84_v27  ;;  %v98_v22 = vld [vmem:[%s1865_s0 + $0x2a0] sm:$0xff] }
  0x99   :  { %1898 = vst [vmem:[#allocation33_spill] sm:$0xff] %v1210_v38  ;;  %1899 = vst [vmem:[#allocation34_spill] sm:$0xff] %v1213_v37  ;;  %v1228_v38 = vmul.f32 %v200_v57, %v93_v5  ;;  %v108_v37 = vld [vmem:[%s1865_s0 + $0x2f0] sm:$0xff]  ;;  %v1245_v5 = vmul.f32 %v200_v57, %v97_v4  ;;  %v1260_v42 = vmul.f32 %v1121_v58, %v85_v49  ;;  %v101_v49 = vld [vmem:[%s1865_s0 + $0x2b8] sm:$0xff] }
  0x9a   :  { %1900 = vst [vmem:[#allocation35_spill] sm:$0xff] %v1226_v54  ;;  %1902 = vst [vmem:[#allocation37_spill] sm:$0xff] %v1230_v14  ;;  %v110_v14 = vld [vmem:[%s1865_s0 + $0x300] sm:$0xff]  ;;  %v1263_v57 = vmul.f32 %v1121_v58, %v86_v48  ;;  %v1266_v4 = vmul.f32 %v1121_v58, %v87_v61  ;;  %v1269_v27 = vmul.f32 %v1121_v58, %v88_v3  ;;  %v1280_v48 = vpop.permute.xlu1 %219 }
  0x9b   :  { %1901 = vst [vmem:[#allocation36_spill] sm:$0xff] %v1228_v38  ;;  %1904 = vst [vmem:[#allocation39_spill] sm:$0xff] %v1243_v39  ;;  %v111_v38 = vld [vmem:[%s1865_s0 + $0x308] sm:$0xff]  ;;  %v1285_v61 = vmul.f32 %v1121_v58, %v89_v13  ;;  %v1288_v3 = vmul.f32 %v1121_v58, %v90_v20  ;;  %v104_v13 = vld [vmem:[%s1865_s0 + $0x2d0] sm:$0xff]  ;;  %v1305_v58 = vmul.f32 %v210_v29, %v108_v37 }
  0x9c   :  { %1905 = vst [vmem:[#allocation40_spill] sm:$0xff] %v1245_v5  ;;  %1906 = vst [vmem:[#allocation41_spill] sm:$0xff] %v1248_v6  ;;  %v99_v6 = vld [vmem:[%s1865_s0 + $0x2a8] sm:$0xff]  ;;  %v100_v5 = vld [vmem:[%s1865_s0 + $0x2b0] sm:$0xff]  ;;  %v1309_v20 = vmul.f32 %v210_v29, %v110_v14  ;;  %v1319_v47 = vmul.f32 %v205_v30, %v101_v49  ;;  %v1325_v37 = vmul.f32 %v205_v30, %v104_v13 }
  0x9d   :  { %1907 = vst [vmem:[#allocation42_spill] sm:$0xff] %v1260_v42  ;;  %1908 = vst [vmem:[#allocation43_spill] sm:$0xff] %v1263_v57  ;;  %v1282_v57 = vpop.permute.xlu0 %214  ;;  %v102_v42 = vld [vmem:[%s1865_s0 + $0x2c0] sm:$0xff]  ;;  %v103_v39 = vld [vmem:[%s1865_s0 + $0x2c8] sm:$0xff] }
  0x9e   :  { %1909 = vst [vmem:[#allocation44_spill] sm:$0xff] %v1266_v4  ;;  %1910 = vst [vmem:[#allocation45_spill] sm:$0xff] %v1269_v27  ;;  %v1290_v27 = vmul.f32 %v210_v29, %v105_v21  ;;  %v1292_v4 = vmul.f32 %v210_v29, %v106_v40  ;;  %v1307_v21 = vmul.f32 %v210_v29, %v109_v46  ;;  %v358_v46 = vpop.permute.xlu1 %357  ;;  %v121_v13 = vld [vmem:[%s1865_s0 + $0x358] sm:$0xff] }
  0x9f   :  { %1911 = vst [vmem:[#allocation46_spill] sm:$0xff] %v1285_v61  ;;  %1912 = vst [vmem:[#allocation47_spill] sm:$0xff] %v1288_v3  ;;  %v1303_v61 = vmul.f32 %v210_v29, %v107_v31  ;;  %v1311_v40 = vmul.f32 %v210_v29, %v111_v38  ;;  %v1317_v3 = vmul.f32 %v205_v30, %v100_v5  ;;  %v119_v5 = vld [vmem:[%s1865_s0 + $0x348] sm:$0xff] }
  0xa0   :  { %1913 = vst [vmem:[#allocation48_spill] sm:$0xff] %v1290_v27  ;;  %1914 = vst [vmem:[#allocation49_spill] sm:$0xff] %v1292_v4  ;;  %v1313_v4 = vmul.f32 %v205_v30, %v98_v22  ;;  %v1315_v27 = vmul.f32 %v205_v30, %v99_v6  ;;  %v1321_v54 = vmul.f32 %v205_v30, %v102_v42 }
  0xa1   :  { %1915 = vst [vmem:[#allocation50_spill] sm:$0xff] %v1307_v21  ;;  %v1323_v31 = vmul.f32 %v205_v30, %v103_v39  ;;  %v353_v21 = vpop.permute.xlu0 %352  ;;  %v437_v14 = vadd.f32 %v358_v46, %v944_v36  ;;  %v438_v38 = vadd.f32 %v358_v46, %v959_v41  ;;  %v439_v29 = vadd.f32 %v358_v46, %v962_v43  ;;  %v120_v39 = vld [vmem:[%s1865_s0 + $0x350] sm:$0xff] }
  0xa2   :  { %v440_v6 = vadd.f32 %v358_v46, %v965_v44  ;;  %v441_v30 = vadd.f32 %v358_v46, %v968_v45  ;;  %v442_v22 = vadd.f32 %v358_v46, %v983_v50  ;;  %v443_v36 = vadd.f32 %v358_v46, %v986_v51 }
  0xa3   :  { %v430_v41 = vadd.f32 %v353_v21, %v877_v8  ;;  %550 = vst [vmem:[%s1866_s3 + $0x38] sm:$0xff] %v437_v14  ;;  %551 = vst [vmem:[%s1866_s3 + $0x40] sm:$0xff] %v438_v38  ;;  %v431_v43 = vadd.f32 %v353_v21, %v879_v9  ;;  %v432_v8 = vadd.f32 %v353_v21, %v881_v10 }
  0xa4   :  { %552 = vst [vmem:[%s1866_s3 + $0x48] sm:$0xff] %v439_v29  ;;  %553 = vst [vmem:[%s1866_s3 + $0x50] sm:$0xff] %v440_v6  ;;  %v433_v44 = vadd.f32 %v353_v21, %v895_v15  ;;  %v434_v45 = vadd.f32 %v353_v21, %v897_v16  ;;  %v435_v9 = vadd.f32 %v353_v21, %v899_v17  ;;  %v368_v15 = vpop.permute.xlu1 %367  ;;  %v123_v6 = vld [vmem:[%s1865_s0 + $0x368] sm:$0xff] }
  0xa5   :  { %554 = vst [vmem:[%s1866_s3 + $0x58] sm:$0xff] %v441_v30  ;;  %555 = vst [vmem:[%s1866_s3 + $0x60] sm:$0xff] %v442_v22  ;;  %v436_v10 = vadd.f32 %v353_v21, %v901_v18  ;;  %v363_v16 = vpop.permute.xlu0 %362  ;;  %v1373_v50 = vmul.f32 %v1280_v48, %v119_v5  ;;  %v1376_v51 = vmul.f32 %v1280_v48, %v120_v39  ;;  %v122_v21 = vld [vmem:[%s1865_s0 + $0x360] sm:$0xff]  ;;  %v124_v5 = vld [vmem:[%s1865_s0 + $0x370] sm:$0xff] }
  0xa6   :  { %556 = vst.msk [vmem:[%s1866_s3 + $0x68] sm:$0xff] %vm548_vm0, %v443_v36  ;;  %542 = vst [vmem:[%s1866_s3] sm:$0xff] %v430_v41  ;;  %v451_v17 = vadd.f32 %v368_v15, %v915_v23  ;;  %v452_v18 = vadd.f32 %v368_v15, %v917_v24  ;;  %v453_v42 = vadd.f32 %v368_v15, %v919_v25  ;;  %v1918_v30 = vld [vmem:[#allocation4_spill] sm:$0xff]  ;;  %v1919_v36 = vld [vmem:[#allocation5_spill] sm:$0xff] }
  0xa7   :  { %543 = vst [vmem:[%s1866_s3 + $0x8] sm:$0xff] %v431_v43  ;;  %544 = vst [vmem:[%s1866_s3 + $0x10] sm:$0xff] %v432_v8  ;;  %v454_v49 = vadd.f32 %v368_v15, %v921_v26  ;;  %v455_v23 = vadd.f32 %v368_v15, %v937_v33  ;;  %v456_v24 = vadd.f32 %v368_v15, %v939_v34  ;;  %v1920_v41 = vld [vmem:[#allocation6_spill] sm:$0xff]  ;;  %v1921_v8 = vld [vmem:[#allocation7_spill] sm:$0xff] }
  0xa8   :  { %545 = vst [vmem:[%s1866_s3 + $0x18] sm:$0xff] %v433_v44  ;;  %546 = vst [vmem:[%s1866_s3 + $0x20] sm:$0xff] %v434_v45  ;;  %v457_v25 = vadd.f32 %v368_v15, %v941_v35  ;;  %v444_v26 = vadd.f32 %v363_v16, %v835_v55  ;;  %v445_v33 = vadd.f32 %v363_v16, %v837_v56  ;;  %v1922_v45 = vld [vmem:[#allocation8_spill] sm:$0xff] }
  0xa9   :  { %547 = vst [vmem:[%s1866_s3 + $0x28] sm:$0xff] %v435_v9  ;;  %549 = vst.msk [vmem:[%s1866_s3 + $0x30] sm:$0xff] %vm548_vm0, %v436_v10  ;;  %v446_v55 = vadd.f32 %v363_v16, %v855_v63  ;;  %v447_v34 = vadd.f32 %v363_v16, %v857_v0  ;;  %v448_v35 = vadd.f32 %v363_v16, %v859_v1  ;;  %v378_v0 = vpop.permute.xlu1 %377  ;;  %v373_v1 = vpop.permute.xlu0 %372  ;;  %v1923_v10 = vld [vmem:[#allocation9_spill] sm:$0xff] }
  0xaa   :  { %564 = vst [vmem:[%s1866_s3 + $0xa8] sm:$0xff] %v451_v17  ;;  %565 = vst [vmem:[%s1866_s3 + $0xb0] sm:$0xff] %v452_v18  ;;  %v449_v56 = vadd.f32 %v363_v16, %v861_v2  ;;  %v450_v63 = vadd.f32 %v363_v16, %v875_v7  ;;  %v1443_v46 = vmul.f32 %v1280_v48, %v121_v13  ;;  %v1924_v16 = vld [vmem:[#allocation10_spill] sm:$0xff] }
  0xab   :  { %566 = vst [vmem:[%s1866_s3 + $0xb8] sm:$0xff] %v453_v42  ;;  %567 = vst [vmem:[%s1866_s3 + $0xc0] sm:$0xff] %v454_v49  ;;  %v1446_v14 = vmul.f32 %v1280_v48, %v122_v21  ;;  %v465_v2 = vadd.f32 %v378_v0, %v989_v52  ;;  %v466_v7 = vadd.f32 %v378_v0, %v992_v53  ;;  %v1916_v52 = vld [vmem:[#allocation2_spill] sm:$0xff]  ;;  %v1925_v21 = vld [vmem:[#allocation11_spill] sm:$0xff] }
  0xac   :  { %568 = vst [vmem:[%s1866_s3 + $0xc8] sm:$0xff] %v455_v23  ;;  %569 = vst [vmem:[%s1866_s3 + $0xd0] sm:$0xff] %v456_v24  ;;  %v467_v38 = vadd.f32 %v378_v0, %v1007_v59  ;;  %v468_v29 = vadd.f32 %v378_v0, %v1010_v60  ;;  %v469_v53 = vadd.f32 %v378_v0, %v1916_v52  ;;  %v1917_v59 = vld [vmem:[#allocation3_spill] sm:$0xff]  ;;  %v1926_v24 = vld [vmem:[#allocation12_spill] sm:$0xff] }
  0xad   :  { %570 = vst.msk [vmem:[%s1866_s3 + $0xd8] sm:$0xff] %vm548_vm0, %v457_v25  ;;  %557 = vst [vmem:[%s1866_s3 + $0x70] sm:$0xff] %v444_v26  ;;  %v470_v60 = vadd.f32 %v378_v0, %v1917_v59  ;;  %v471_v39 = vadd.f32 %v378_v0, %v1033_v19  ;;  %v458_v22 = vadd.f32 %v373_v1, %v1918_v30  ;;  %v388_v18 = vpop.permute.xlu1 %387  ;;  %v383_v42 = vpop.permute.xlu0 %382  ;;  %v1927_v26 = vld [vmem:[#allocation13_spill] sm:$0xff]  ;;  %v1936_v30 = vld [vmem:[#allocation22_spill] sm:$0xff] }
  0xae   :  { %558 = vst [vmem:[%s1866_s3 + $0x78] sm:$0xff] %v445_v33  ;;  %559 = vst [vmem:[%s1866_s3 + $0x80] sm:$0xff] %v446_v55  ;;  %v459_v19 = vadd.f32 %v373_v1, %v1919_v36  ;;  %v460_v43 = vadd.f32 %v373_v1, %v1920_v41  ;;  %v461_v44 = vadd.f32 %v373_v1, %v1921_v8  ;;  %v1928_v55 = vld [vmem:[#allocation14_spill] sm:$0xff]  ;;  %v1937_v36 = vld [vmem:[#allocation23_spill] sm:$0xff] }
  0xaf   :  { %560 = vst [vmem:[%s1866_s3 + $0x88] sm:$0xff] %v447_v34  ;;  %561 = vst [vmem:[%s1866_s3 + $0x90] sm:$0xff] %v448_v35  ;;  %v462_v9 = vadd.f32 %v373_v1, %v1922_v45  ;;  %v463_v15 = vadd.f32 %v373_v1, %v1923_v10  ;;  %v464_v17 = vadd.f32 %v373_v1, %v1924_v16  ;;  %v125_v35 = vld [vmem:[%s1865_s0 + $0x378] sm:$0xff]  ;;  %v1930_v1 = vld [vmem:[#allocation16_spill] sm:$0xff] }
  0xb0   :  { %562 = vst [vmem:[%s1866_s3 + $0x98] sm:$0xff] %v449_v56  ;;  %563 = vst.msk [vmem:[%s1866_s3 + $0xa0] sm:$0xff] %vm548_vm0, %v450_v63  ;;  %v1513_v49 = vmul.f32 %v1280_v48, %v123_v6  ;;  %v1516_v13 = vmul.f32 %v1280_v48, %v124_v5  ;;  %v479_v23 = vadd.f32 %v388_v18, %v1925_v21  ;;  %v112_v56 = vld [vmem:[%s1865_s0 + $0x310] sm:$0xff]  ;;  %v1929_v63 = vld [vmem:[#allocation15_spill] sm:$0xff] }
  0xb1   :  { %578 = vst [vmem:[%s1866_s3 + $0x118] sm:$0xff] %v465_v2  ;;  %579 = vst [vmem:[%s1866_s3 + $0x120] sm:$0xff] %v466_v7  ;;  %v480_v25 = vadd.f32 %v388_v18, %v1926_v24  ;;  %v481_v33 = vadd.f32 %v388_v18, %v1927_v26  ;;  %v482_v34 = vadd.f32 %v388_v18, %v1928_v55  ;;  %v1931_v7 = vld [vmem:[#allocation17_spill] sm:$0xff]  ;;  %v1933_v5 = vld [vmem:[#allocation19_spill] sm:$0xff]  ;;  %v393_v8 = vpop.permute.xlu0 %392 }
  0xb2   :  { %580 = vst [vmem:[%s1866_s3 + $0x128] sm:$0xff] %v467_v38  ;;  %581 = vst [vmem:[%s1866_s3 + $0x130] sm:$0xff] %v468_v29  ;;  %v483_v0 = vadd.f32 %v388_v18, %v1929_v63  ;;  %v484_v2 = vadd.f32 %v388_v18, %v1930_v1  ;;  %v485_v38 = vadd.f32 %v388_v18, %v1931_v7  ;;  %v1932_v29 = vld [vmem:[#allocation18_spill] sm:$0xff]  ;;  %v1946_v63 = vld [vmem:[#allocation32_spill] sm:$0xff] }
  0xb3   :  { %582 = vst [vmem:[%s1866_s3 + $0x138] sm:$0xff] %v469_v53  ;;  %583 = vst [vmem:[%s1866_s3 + $0x140] sm:$0xff] %v470_v60  ;;  %v472_v6 = vadd.f32 %v383_v42, %v1932_v29  ;;  %v473_v52 = vadd.f32 %v383_v42, %v1933_v5  ;;  %v1934_v53 = vld [vmem:[#allocation20_spill] sm:$0xff]  ;;  %v1935_v60 = vld [vmem:[#allocation21_spill] sm:$0xff]  ;;  %v478_v41 = vadd.f32 %v383_v42, %v1151_v12 }
  0xb4   :  { %584 = vst.msk [vmem:[%s1866_s3 + $0x148] sm:$0xff] %vm548_vm0, %v471_v39  ;;  %571 = vst [vmem:[%s1866_s3 + $0xe0] sm:$0xff] %v458_v22  ;;  %v474_v59 = vadd.f32 %v383_v42, %v1934_v53  ;;  %v475_v39 = vadd.f32 %v383_v42, %v1935_v60  ;;  %v476_v22 = vadd.f32 %v383_v42, %v1936_v30  ;;  %v1938_v12 = vld [vmem:[#allocation24_spill] sm:$0xff]  ;;  %v114_v18 = vld [vmem:[%s1865_s0 + $0x320] sm:$0xff] }
  0xb5   :  { %572 = vst [vmem:[%s1866_s3 + $0xe8] sm:$0xff] %v459_v19  ;;  %573 = vst [vmem:[%s1866_s3 + $0xf0] sm:$0xff] %v460_v43  ;;  %v477_v19 = vadd.f32 %v383_v42, %v1937_v36  ;;  %v398_v43 = vpop.permute.xlu1 %397  ;;  %v1586_v45 = vmul.f32 %v1282_v57, %v112_v56  ;;  %v489_v56 = vadd.f32 %v393_v8, %v1204_v28  ;;  %v1947_v1 = vld [vmem:[#allocation33_spill] sm:$0xff]  ;;  %v1948_v7 = vld [vmem:[#allocation34_spill] sm:$0xff]  ;;  %v403_v29 = vpop.permute.xlu0 %402 }
  0xb6   :  { %574 = vst [vmem:[%s1866_s3 + $0xf8] sm:$0xff] %v461_v44  ;;  %575 = vst [vmem:[%s1866_s3 + $0x100] sm:$0xff] %v462_v9  ;;  %v1583_v44 = vmul.f32 %v1280_v48, %v125_v35  ;;  %v493_v48 = vadd.f32 %v398_v43, %v1938_v12  ;;  %v1939_v9 = vld [vmem:[#allocation25_spill] sm:$0xff]  ;;  %v496_v16 = vadd.f32 %v398_v43, %v1168_v32  ;;  %v1941_v32 = vld [vmem:[#allocation27_spill] sm:$0xff] }
  0xb7   :  { %576 = vst [vmem:[%s1866_s3 + $0x108] sm:$0xff] %v463_v15  ;;  %577 = vst.msk [vmem:[%s1866_s3 + $0x110] sm:$0xff] %vm548_vm0, %v464_v17  ;;  %v494_v10 = vadd.f32 %v398_v43, %v1939_v9  ;;  %v495_v15 = vadd.f32 %v398_v43, %v1166_v11  ;;  %v113_v17 = vld [vmem:[%s1865_s0 + $0x318] sm:$0xff]  ;;  %v1940_v11 = vld [vmem:[#allocation26_spill] sm:$0xff]  ;;  %v498_v21 = vadd.f32 %v398_v43, %v1941_v32 }
  0xb8   :  { %592 = vst [vmem:[%s1866_s3 + $0x188] sm:$0xff] %v479_v23  ;;  %593 = vst [vmem:[%s1866_s3 + $0x190] sm:$0xff] %v480_v25  ;;  %v497_v42 = vadd.f32 %v398_v43, %v1940_v11  ;;  %v1942_v23 = vld [vmem:[#allocation28_spill] sm:$0xff]  ;;  %v1943_v25 = vld [vmem:[#allocation29_spill] sm:$0xff]  ;;  %v1656_v5 = vmul.f32 %v1282_v57, %v114_v18 }
  0xb9   :  { %594 = vst [vmem:[%s1866_s3 + $0x198] sm:$0xff] %v481_v33  ;;  %595 = vst [vmem:[%s1866_s3 + $0x1a0] sm:$0xff] %v482_v34  ;;  %v499_v24 = vadd.f32 %v398_v43, %v1942_v23  ;;  %v486_v26 = vadd.f32 %v393_v8, %v1943_v25  ;;  %v1944_v33 = vld [vmem:[#allocation30_spill] sm:$0xff]  ;;  %v1945_v34 = vld [vmem:[#allocation31_spill] sm:$0xff]  ;;  %v408_v28 = vpop.permute.xlu1 %407 }
  0xba   :  { %596 = vst [vmem:[%s1866_s3 + $0x1a8] sm:$0xff] %v483_v0  ;;  %597 = vst [vmem:[%s1866_s3 + $0x1b0] sm:$0xff] %v484_v2  ;;  %v487_v55 = vadd.f32 %v393_v8, %v1944_v33  ;;  %v488_v35 = vadd.f32 %v393_v8, %v1945_v34  ;;  %v490_v0 = vadd.f32 %v393_v8, %v1946_v63  ;;  %v1949_v53 = vld [vmem:[#allocation35_spill] sm:$0xff]  ;;  %v1950_v60 = vld [vmem:[#allocation36_spill] sm:$0xff] }
  0xbb   :  { %598 = vst.msk [vmem:[%s1866_s3 + $0x1b8] sm:$0xff] %vm548_vm0, %v485_v38  ;;  %585 = vst [vmem:[%s1866_s3 + $0x150] sm:$0xff] %v472_v6  ;;  %v491_v2 = vadd.f32 %v393_v8, %v1947_v1  ;;  %v492_v38 = vadd.f32 %v393_v8, %v1948_v7  ;;  %v1653_v6 = vmul.f32 %v1282_v57, %v113_v17  ;;  %v1951_v30 = vld [vmem:[#allocation37_spill] sm:$0xff]  ;;  %v115_v36 = vld [vmem:[%s1865_s0 + $0x328] sm:$0xff] }
  0xbc   :  { %586 = vst [vmem:[%s1866_s3 + $0x158] sm:$0xff] %v473_v52  ;;  %587 = vst [vmem:[%s1866_s3 + $0x160] sm:$0xff] %v474_v59  ;;  %v507_v52 = vadd.f32 %v408_v28, %v1224_v62  ;;  %v508_v59 = vadd.f32 %v408_v28, %v1949_v53  ;;  %v1952_v62 = vld [vmem:[#allocation38_spill] sm:$0xff]  ;;  %v1953_v43 = vld [vmem:[#allocation39_spill] sm:$0xff]  ;;  %v323_v34 = vmul.f32 %v1282_v57, %v115_v36 }
  0xbd   :  { %588 = vst [vmem:[%s1866_s3 + $0x168] sm:$0xff] %v475_v39  ;;  %589 = vst [vmem:[%s1866_s3 + $0x170] sm:$0xff] %v476_v22  ;;  %v509_v39 = vadd.f32 %v408_v28, %v1950_v60  ;;  %v510_v22 = vadd.f32 %v408_v28, %v1951_v30  ;;  %v512_v8 = vadd.f32 %v408_v28, %v1953_v43  ;;  %v1954_v12 = vld [vmem:[#allocation40_spill] sm:$0xff]  ;;  %v1955_v9 = vld [vmem:[#allocation41_spill] sm:$0xff]  ;;  %v418_v33 = vpop.permute.xlu1 %417 }
  0xbe   :  { %590 = vst [vmem:[%s1866_s3 + $0x178] sm:$0xff] %v477_v19  ;;  %591 = vst.msk [vmem:[%s1866_s3 + $0x180] sm:$0xff] %vm548_vm0, %v478_v41  ;;  %v116_v19 = vld [vmem:[%s1865_s0 + $0x330] sm:$0xff]  ;;  %v511_v41 = vadd.f32 %v408_v28, %v1952_v62  ;;  %v1957_v17 = vld [vmem:[#allocation43_spill] sm:$0xff]  ;;  %v524_v7 = vadd.f32 %v418_v33, %v1305_v58  ;;  %v526_v58 = vadd.f32 %v418_v33, %v1309_v20 }
  0xbf   :  { %606 = vst [vmem:[%s1866_s3 + $0x1f8] sm:$0xff] %v493_v48  ;;  %607 = vst [vmem:[%s1866_s3 + $0x200] sm:$0xff] %v494_v10  ;;  %v513_v48 = vadd.f32 %v408_v28, %v1954_v12  ;;  %v500_v10 = vadd.f32 %v403_v29, %v1955_v9  ;;  %v502_v18 = vadd.f32 %v403_v29, %v1957_v17  ;;  %v1958_v11 = vld [vmem:[#allocation44_spill] sm:$0xff]  ;;  %v1959_v32 = vld [vmem:[#allocation45_spill] sm:$0xff] }
  0xc0   :  { %608 = vst [vmem:[%s1866_s3 + $0x208] sm:$0xff] %v495_v15  ;;  %609 = vst [vmem:[%s1866_s3 + $0x210] sm:$0xff] %v496_v16  ;;  %v1956_v15 = vld [vmem:[#allocation42_spill] sm:$0xff]  ;;  %v1961_v25 = vld [vmem:[#allocation47_spill] sm:$0xff] }
  0xc1   :  { %610 = vst [vmem:[%s1866_s3 + $0x218] sm:$0xff] %v497_v42  ;;  %611 = vst [vmem:[%s1866_s3 + $0x220] sm:$0xff] %v498_v21  ;;  %v501_v16 = vadd.f32 %v403_v29, %v1956_v15  ;;  %v503_v42 = vadd.f32 %v403_v29, %v1958_v11  ;;  %v504_v21 = vadd.f32 %v403_v29, %v1959_v32  ;;  %v1960_v23 = vld [vmem:[#allocation46_spill] sm:$0xff] }
  0xc2   :  { %612 = vst.msk [vmem:[%s1866_s3 + $0x228] sm:$0xff] %vm548_vm0, %v499_v24  ;;  %599 = vst [vmem:[%s1866_s3 + $0x1c0] sm:$0xff] %v486_v26  ;;  %v505_v24 = vadd.f32 %v403_v29, %v1960_v23  ;;  %v506_v26 = vadd.f32 %v403_v29, %v1961_v25  ;;  %v118_v28 = vld [vmem:[%s1865_s0 + $0x340] sm:$0xff] }
  0xc3   :  { %600 = vst [vmem:[%s1866_s3 + $0x1c8] sm:$0xff] %v487_v55  ;;  %601 = vst [vmem:[%s1866_s3 + $0x1d0] sm:$0xff] %v488_v35  ;;  %v413_v55 = vpop.permute.xlu0 %412  ;;  %v324_v35 = vmul.f32 %v1282_v57, %v116_v19 }
  0xc4   :  { %602 = vst [vmem:[%s1866_s3 + $0x1d8] sm:$0xff] %v489_v56  ;;  %603 = vst [vmem:[%s1866_s3 + $0x1e0] sm:$0xff] %v490_v0  ;;  %v1962_v56 = vld [vmem:[#allocation48_spill] sm:$0xff]  ;;  %v1963_v0 = vld [vmem:[#allocation49_spill] sm:$0xff]  ;;  %v514_v53 = vadd.f32 %v413_v55, %v1313_v4  ;;  %v515_v20 = vadd.f32 %v413_v55, %v1315_v27  ;;  %v516_v4 = vadd.f32 %v413_v55, %v1317_v3 }
  0xc5   :  { %604 = vst [vmem:[%s1866_s3 + $0x1e8] sm:$0xff] %v491_v2  ;;  %605 = vst.msk [vmem:[%s1866_s3 + $0x1f0] sm:$0xff] %vm548_vm0, %v492_v38  ;;  %v521_v63 = vadd.f32 %v418_v33, %v1962_v56  ;;  %v522_v1 = vadd.f32 %v418_v33, %v1963_v0  ;;  %v523_v2 = vadd.f32 %v418_v33, %v1303_v61  ;;  %v117_v38 = vld [vmem:[%s1865_s0 + $0x338] sm:$0xff]  ;;  %v1964_v61 = vld [vmem:[#allocation50_spill] sm:$0xff] }
  0xc6   :  { %620 = vst [vmem:[%s1866_s3 + $0x268] sm:$0xff] %v507_v52  ;;  %621 = vst [vmem:[%s1866_s3 + $0x270] sm:$0xff] %v508_v59  ;;  %v525_v29 = vadd.f32 %v418_v33, %v1964_v61  ;;  %v527_v52 = vadd.f32 %v418_v33, %v1311_v40  ;;  %v517_v40 = vadd.f32 %v413_v55, %v1319_v47 }
  0xc7   :  { %622 = vst [vmem:[%s1866_s3 + $0x278] sm:$0xff] %v509_v39  ;;  %623 = vst [vmem:[%s1866_s3 + $0x280] sm:$0xff] %v510_v22  ;;  %v518_v59 = vadd.f32 %v413_v55, %v1321_v54  ;;  %v519_v27 = vadd.f32 %v413_v55, %v1323_v31  ;;  %v520_v3 = vadd.f32 %v413_v55, %v1325_v37  ;;  %v428_v54 = vpop.permute.xlu1 %427  ;;  %v423_v47 = vpop.permute.xlu0 %422 }
  0xc8   :  { %624 = vst [vmem:[%s1866_s3 + $0x288] sm:$0xff] %v511_v41  ;;  %625 = vst [vmem:[%s1866_s3 + $0x290] sm:$0xff] %v512_v8  ;;  %v325_v60 = vmul.f32 %v1282_v57, %v117_v38  ;;  %v326_v39 = vmul.f32 %v1282_v57, %v118_v28  ;;  %v535_v31 = vadd.f32 %v428_v54, %v1373_v50 }
  0xc9   :  { %626 = vst.msk [vmem:[%s1866_s3 + $0x298] sm:$0xff] %vm548_vm0, %v513_v48  ;;  %613 = vst [vmem:[%s1866_s3 + $0x230] sm:$0xff] %v500_v10  ;;  %v536_v57 = vadd.f32 %v428_v54, %v1376_v51  ;;  %v537_v37 = vadd.f32 %v428_v54, %v1443_v46  ;;  %v538_v30 = vadd.f32 %v428_v54, %v1446_v14 }
  0xca   :  { %614 = vst [vmem:[%s1866_s3 + $0x238] sm:$0xff] %v501_v16  ;;  %615 = vst [vmem:[%s1866_s3 + $0x240] sm:$0xff] %v502_v18  ;;  %v539_v22 = vadd.f32 %v428_v54, %v1513_v49  ;;  %v540_v36 = vadd.f32 %v428_v54, %v1516_v13  ;;  %v541_v50 = vadd.f32 %v428_v54, %v1583_v44 }
  0xcb   :  { %616 = vst [vmem:[%s1866_s3 + $0x248] sm:$0xff] %v503_v42  ;;  %617 = vst [vmem:[%s1866_s3 + $0x250] sm:$0xff] %v504_v21  ;;  %v528_v51 = vadd.f32 %v423_v47, %v1586_v45  ;;  %v529_v46 = vadd.f32 %v423_v47, %v1653_v6  ;;  %v530_v14 = vadd.f32 %v423_v47, %v1656_v5 }
  0xcc   :  { %618 = vst [vmem:[%s1866_s3 + $0x258] sm:$0xff] %v505_v24  ;;  %619 = vst.msk [vmem:[%s1866_s3 + $0x260] sm:$0xff] %vm548_vm0, %v506_v26  ;;  %v531_v49 = vadd.f32 %v423_v47, %v323_v34  ;;  %v532_v13 = vadd.f32 %v423_v47, %v324_v35  ;;  %v533_v44 = vadd.f32 %v423_v47, %v325_v60 }
  0xcd   :  { %634 = vst [vmem:[%s1866_s3 + $0x2d8] sm:$0xff] %v521_v63  ;;  %635 = vst [vmem:[%s1866_s3 + $0x2e0] sm:$0xff] %v522_v1  ;;  %v534_v45 = vadd.f32 %v423_v47, %v326_v39 }
  0xce   :  { %636 = vst [vmem:[%s1866_s3 + $0x2e8] sm:$0xff] %v523_v2  ;;  %637 = vst [vmem:[%s1866_s3 + $0x2f0] sm:$0xff] %v524_v7 }
  0xcf   :  { %638 = vst [vmem:[%s1866_s3 + $0x2f8] sm:$0xff] %v525_v29  ;;  %639 = vst [vmem:[%s1866_s3 + $0x300] sm:$0xff] %v526_v58 }
  0xd0   :  { %640 = vst.msk [vmem:[%s1866_s3 + $0x308] sm:$0xff] %vm548_vm0, %v527_v52  ;;  %627 = vst [vmem:[%s1866_s3 + $0x2a0] sm:$0xff] %v514_v53 }
  0xd1   :  { %628 = vst [vmem:[%s1866_s3 + $0x2a8] sm:$0xff] %v515_v20  ;;  %629 = vst [vmem:[%s1866_s3 + $0x2b0] sm:$0xff] %v516_v4 }
  0xd2   :  { %630 = vst [vmem:[%s1866_s3 + $0x2b8] sm:$0xff] %v517_v40  ;;  %631 = vst [vmem:[%s1866_s3 + $0x2c0] sm:$0xff] %v518_v59 }
  0xd3   :  { %632 = vst [vmem:[%s1866_s3 + $0x2c8] sm:$0xff] %v519_v27  ;;  %633 = vst.msk [vmem:[%s1866_s3 + $0x2d0] sm:$0xff] %vm548_vm0, %v520_v3 }
  0xd4   :  { %648 = vst [vmem:[%s1866_s3 + $0x348] sm:$0xff] %v535_v31  ;;  %649 = vst [vmem:[%s1866_s3 + $0x350] sm:$0xff] %v536_v57 }
  0xd5   :  { %650 = vst [vmem:[%s1866_s3 + $0x358] sm:$0xff] %v537_v37  ;;  %651 = vst [vmem:[%s1866_s3 + $0x360] sm:$0xff] %v538_v30 }
  0xd6   :  { %652 = vst [vmem:[%s1866_s3 + $0x368] sm:$0xff] %v539_v22  ;;  %653 = vst [vmem:[%s1866_s3 + $0x370] sm:$0xff] %v540_v36 }
  0xd7   :  { %654 = vst.msk [vmem:[%s1866_s3 + $0x378] sm:$0xff] %vm548_vm0, %v541_v50  ;;  %641 = vst [vmem:[%s1866_s3 + $0x310] sm:$0xff] %v528_v51 }
  0xd8   :  { %642 = vst [vmem:[%s1866_s3 + $0x318] sm:$0xff] %v529_v46  ;;  %643 = vst [vmem:[%s1866_s3 + $0x320] sm:$0xff] %v530_v14 }
  0xd9   :  { %644 = vst [vmem:[%s1866_s3 + $0x328] sm:$0xff] %v531_v49  ;;  %645 = vst [vmem:[%s1866_s3 + $0x330] sm:$0xff] %v532_v13 }
  0xda   :  { %646 = vst [vmem:[%s1866_s3 + $0x338] sm:$0xff] %v533_v44  ;;  %647 = vst.msk [vmem:[%s1866_s3 + $0x340] sm:$0xff] %vm548_vm0, %v534_v45 }

</bundles_post_ra>
